<compile_context>
chip_gen: v7x
topology: tpu7x:2x2x1
jax: 0.10.0
libtpu: 0.0.40
codegen_flags: <defaults>
</compile_context>

<pallas_src>
import functools
import numpy as np

import jax
import jax.numpy as jnp
from jax.experimental import pallas as pl
from jax.experimental.pallas import tpu as pltpu

INVALID_MASK_VALUE = -1000.0


def _round_up(x, m):
    return ((x + m - 1) // m) * m


def _cdiv(a, b):
    return -(-a // b)


def _vmem_limit_bytes():
    # Generation-aware VMEM budget: ~3/4 of physical (<=96 MiB), safe fallback.
    try:
        cap = pltpu.get_tpu_info().vmem_capacity_bytes
        return int(min(96 * 1024 * 1024, (cap * 3) // 4))
    except Exception:
        return 32 * 1024 * 1024


# --------------------------- fused Pallas kernel -----------------------------

def _octree_swin_attn_kernel(x_ref, b_ref, d_ref, wq_ref, bq_ref, wp_ref, bp_ref,
                             o_ref, attn_ref, *, num_heads, approx_recip):
    rows, c = x_ref.shape                     # rows = tp * K
    tp, k_sz = b_ref.shape
    ch = c // num_heads

    # ---- fused QKV projection (weights resident; scale pre-folded into q) ----
    qkv = jnp.dot(x_ref[...], wq_ref[...], preferred_element_type=jnp.float32)
    qkv = qkv + bq_ref[...].astype(jnp.float32)          # (rows, 3C) f32
    qkv = qkv.astype(x_ref.dtype)                         # bf16 on production path

    # ---- additive attention mask from per-token batch / depth ids -----------
    # Reference sums a 'neq' batch mask and a 'le' depth mask (-1000 each); a
    # single select is numerically identical on kept rows (masked logits
    # underflow to exactly 0 after the max-subtracted exp).
    b = b_ref[...]                                        # (tp, K) int32
    d = d_ref[...]                                        # (tp, K) int32
    bi, bj = b[:, :, None], b[:, None, :]
    di, dj = d[:, :, None], d[:, None, :]
    pad_tok = (bi == -1) | (bj == -1) | (di == -1) | (dj == -1)
    masked = (bi != bj) | (di < dj) | pad_tok
    mask = jnp.where(masked, jnp.float32(INVALID_MASK_VALUE), jnp.float32(0.0))

    # ---- per-head attention; head outputs assembled in VMEM scratch ---------
    for h in range(num_heads):
        qh = qkv[:, h * ch:(h + 1) * ch].reshape(tp, k_sz, ch)
        kh = qkv[:, c + h * ch: c + (h + 1) * ch].reshape(tp, k_sz, ch)
        vh = qkv[:, 2 * c + h * ch: 2 * c + (h + 1) * ch].reshape(tp, k_sz, ch)

        s = jnp.einsum('pkd,pjd->pkj', qh, kh,
                       preferred_element_type=jnp.float32)          # (tp, K, K)
        s = s + mask
        s_max = jnp.max(s, axis=-1, keepdims=True)
        e = jnp.exp(s - s_max)
        denom = jnp.sum(e, axis=-1, keepdims=True)
        if approx_recip:
            p = e * pl.reciprocal(denom, approx=True)                # EUP slot
        else:
            p = e / denom
        oh = jnp.einsum('pkj,pjd->pkd', p.astype(vh.dtype), vh,
                        preferred_element_type=jnp.float32)          # (tp, K, Ch)
        attn_ref[:, h * ch:(h + 1) * ch] = (
            oh.reshape(rows, ch).astype(attn_ref.dtype))

    # ---- fused output projection: single (rows, C) x (C, C) MXU matmul ------
    y = jnp.dot(attn_ref[...], wp_ref[...], preferred_element_type=jnp.float32)
    y = y + bp_ref[...].astype(jnp.float32)
    o_ref[...] = y.astype(o_ref.dtype)


# ------------------------------ forward (Pallas) ------------------------------

def octree_attention_forward(data, batch_idx, depth_idx, params, *,
                             patch_size, num_heads, batch_size,
                             compute_dtype=jnp.bfloat16,
                             block_patches=256, out_dtype=jnp.float32):
    """OctreeAttention.forward with dilation=1, use_swin=True, eval mode."""
    N, C = data.shape
    K = patch_size
    H = num_heads
    Ch = C // H
    scale = float(Ch) ** -0.5
    swin_pad = K // 2

    cd = jnp.dtype(compute_dtype)
    approx = (cd == jnp.dtype(jnp.bfloat16))

    # Fold the softmax scale into the q columns of w_qkv / b_qkv (one-time op).
    col_scale = jnp.concatenate([jnp.full((C,), scale, jnp.float32),
                                 jnp.ones((2 * C,), jnp.float32)])[None, :]
    w_qkv = (params['w_qkv'].astype(jnp.float32) * col_scale).astype(cd)
    b_qkv = params['b_qkv'].astype(jnp.float32) * col_scale         # stays f32
    w_proj = params['w_proj'].astype(cd)
    b_proj = params['b_proj'].astype(jnp.float32)

    # Patch tiling: >=2 grid steps when possible (v7x has 2 TensorCores); the
    # padded length is already a multiple of tp*K so the kernel never re-pads.
    P0 = _cdiv(N + swin_pad, K)
    if P0 > 8:
        tp = min(max(8, block_patches), _round_up(_cdiv(P0, 2), 8))
    else:
        tp = 8
    # Keep per-step f32 intermediates (qkv + attn + temporaries) within budget.
    while tp > 8 and tp * K * (5 * C) * 4 > 8 * 1024 * 1024:
        tp = max(8, _round_up(tp // 2, 8))
    P_pad = _round_up(P0, tp)
    total = P_pad * K
    tail_n = total - N - swin_pad

    # Single padding step of the activations (swin shift + tail), in compute dtype.
    x = jnp.pad(data.astype(cd), ((swin_pad, tail_n), (0, 0)))       # (total, C)

    bidx = batch_idx.astype(jnp.int32)
    didx = depth_idx.astype(jnp.int32)
    head_i = jnp.full((swin_pad,), -1, jnp.int32)
    b_patch = jnp.concatenate(
        [head_i, bidx, jnp.full((tail_n,), jnp.int32(batch_size), jnp.int32)]
    ).reshape(P_pad, K)
    d_patch = jnp.concatenate(
        [head_i, didx, jnp.full((tail_n,), didx.max() + 1, jnp.int32)]
    ).reshape(P_pad, K)

    # TODO(synk): RotaryPosEmb(rope_mixed=True) source is not provided in the
    # reference; applied as identity here.

    kern = functools.partial(_octree_swin_attn_kernel, num_heads=H,
                             approx_recip=approx)
    cost = pl.CostEstimate(
        flops=(2 * total * C * 3 * C                    # fused qkv projection
               + P_pad * H * 4 * K * K * Ch             # scores + PV
               + 2 * total * C * C),                    # fused output projection
        transcendentals=P_pad * H * K * K,
        bytes_accessed=(x.size * x.dtype.itemsize
                        + b_patch.size * 4 + d_patch.size * 4
                        + w_qkv.size * w_qkv.dtype.itemsize + b_qkv.size * 4
                        + w_proj.size * w_proj.dtype.itemsize + b_proj.size * 4
                        + total * C * jnp.dtype(out_dtype).itemsize))

    out = pl.pallas_call(
        kern,
        out_shape=jax.ShapeDtypeStruct((total, C), out_dtype),
        grid=(P_pad // tp,),
        in_specs=[
            pl.BlockSpec((tp * K, C), lambda i: (i, 0)),     # activations tile
            pl.BlockSpec((tp, K), lambda i: (i, 0)),         # batch ids
            pl.BlockSpec((tp, K), lambda i: (i, 0)),         # depth ids
            pl.BlockSpec((C, 3 * C), lambda i: (0, 0)),      # resident w_qkv
            pl.BlockSpec((1, 3 * C), lambda i: (0, 0)),      # resident b_qkv
            pl.BlockSpec((C, C), lambda i: (0, 0)),          # resident w_proj
            pl.BlockSpec((1, C), lambda i: (0, 0)),          # resident b_proj
        ],
        out_specs=pl.BlockSpec((tp * K, C), lambda i: (i, 0)),
        scratch_shapes=[pltpu.VMEM((tp * K, C), cd)],        # head-output slab
        compiler_params=pltpu.CompilerParams(
            dimension_semantics=("parallel",),
            vmem_limit_bytes=_vmem_limit_bytes()),
        cost_estimate=cost,
    )(x, b_patch, d_patch, w_qkv, b_qkv, w_proj, b_proj)

    # patch_reverse(use_swin=True); proj_drop(p=0) is identity in eval mode.
    return out[swin_pad:N + swin_pad]


# ---------------------------- pure-JAX reference ------------------------------

def _patch_partition(data, nnum_t, swin_pad, swin_nnum_a, fill_value):
    head = jnp.full((swin_pad,) + data.shape[1:], -1, dtype=data.dtype)
    tail_n = swin_nnum_a - nnum_t - swin_pad
    tail = jnp.full((tail_n,) + data.shape[1:], fill_value, dtype=data.dtype)
    return jnp.concatenate([head, data, tail], axis=0)


def _calc_attn_mask(mask, cond):
    diff = mask[:, :, None] - mask[:, None, :]
    swin = jnp.logical_or(mask[:, :, None] == -1, mask[:, None, :] == -1)
    if cond == 'neq':
        label = jnp.logical_or(diff != 0, swin)
    elif cond == 'le':
        label = jnp.logical_or(diff < 0, swin)
    else:
        raise ValueError('Invalid condition')
    return jnp.where(label, jnp.float32(INVALID_MASK_VALUE), jnp.float32(0.0))


def octree_attention_reference(data, batch_idx, depth_idx, params, *,
                               patch_size, num_heads, batch_size):
    N, C = data.shape
    K, H = patch_size, num_heads
    Ch = C // H
    scale = float(Ch) ** -0.5
    swin_pad = K // 2
    swin_nnum_a = int(np.ceil((N + swin_pad) / K) * K)
    P = swin_nnum_a // K

    b_patch = _patch_partition(batch_idx.astype(jnp.int32), N, swin_pad,
                               swin_nnum_a, jnp.int32(batch_size)).reshape(P, K)
    d_patch = _patch_partition(depth_idx.astype(jnp.int32), N, swin_pad,
                               swin_nnum_a,
                               depth_idx.astype(jnp.int32).max() + 1).reshape(P, K)
    mask = _calc_attn_mask(b_patch, 'neq') + _calc_attn_mask(d_patch, 'le')

    x = data.astype(jnp.float32)
    qkv = x @ params['w_qkv'].astype(jnp.float32) + params['b_qkv'].astype(jnp.float32)
    qkv = _patch_partition(qkv, N, swin_pad, swin_nnum_a, jnp.float32(0.0))
    qkv = qkv.reshape(P, K, 3, H, Ch).transpose(2, 0, 3, 1, 4)
    q, k, v = qkv[0], qkv[1], qkv[2]
    s = jnp.einsum('phkd,phjd->phkj', q, k) * scale + mask[:, None, :, :]
    p = jax.nn.softmax(s, axis=-1)
    o = jnp.einsum('phkj,phjd->phkd', p, v)
    o = o.transpose(0, 2, 1, 3).reshape(P * K, C)[swin_pad:N + swin_pad]
    return o @ params['w_proj'].astype(jnp.float32) + params['b_proj'].astype(jnp.float32)


# ------------------------------------ main ------------------------------------

if __name__ == "__main__":
    def make_case(key, n, c, batch_size):
        ks = jax.random.split(key, 7)
        data = jax.random.normal(ks[0], (n, c), jnp.float32)
        params = {
            'w_qkv': jax.random.normal(ks[1], (c, 3 * c), jnp.float32) * 0.1,
            'b_qkv': jax.random.normal(ks[2], (1, 3 * c), jnp.float32) * 0.1,
            'w_proj': jax.random.normal(ks[3], (c, c), jnp.float32) * 0.1,
            'b_proj': jax.random.normal(ks[4], (1, c), jnp.float32) * 0.1,
        }
        batch_idx = jnp.sort(jax.random.randint(ks[5], (n,), 0, batch_size)).astype(jnp.int32)
        depth_idx = jax.random.randint(ks[6], (n,), 0, 3).astype(jnp.int32)
        return data, batch_idx, depth_idx, params

    key = jax.random.PRNGKey(0)
    k1, k2 = jax.random.split(key)

    # Case 1: tiny shapes, f32 compute -> strict check against pure-JAX reference.
    N, C, H, K, B = 20, 32, 4, 8, 2
    data, bidx, didx, params = make_case(k1, N, C, B)
    out = octree_attention_forward(data, bidx, didx, params, patch_size=K,
                                   num_heads=H, batch_size=B,
                                   compute_dtype=jnp.float32)
    jax.block_until_ready(out)
    ref = octree_attention_reference(data, bidx, didx, params, patch_size=K,
                                     num_heads=H, batch_size=B)
    assert out.shape == (N, C), out.shape
    np.testing.assert_allclose(np.asarray(out), np.asarray(ref), rtol=5e-4, atol=5e-4)

    # Case 2: larger shapes (two grid steps over the patch axis), f32 strict check.
    N2, C2, H2, K2, B2 = 600, 64, 8, 8, 3
    data2, bidx2, didx2, params2 = make_case(k2, N2, C2, B2)
    out2 = octree_attention_forward(data2, bidx2, didx2, params2, patch_size=K2,
                                    num_heads=H2, batch_size=B2,
                                    compute_dtype=jnp.float32)
    jax.block_until_ready(out2)
    ref2 = octree_attention_reference(data2, bidx2, didx2, params2, patch_size=K2,
                                      num_heads=H2, batch_size=B2)
    np.testing.assert_allclose(np.asarray(out2), np.asarray(ref2), rtol=1e-3, atol=1e-3)

    # Production path: bf16 MXU matmuls + approx EUP reciprocal, jitted (loose check).
    fwd_bf16 = jax.jit(functools.partial(
        octree_attention_forward, patch_size=K2, num_heads=H2, batch_size=B2,
        compute_dtype=jnp.bfloat16))
    out2_bf16 = fwd_bf16(data2, bidx2, didx2, params2)
    jax.block_until_ready(out2_bf16)
    assert np.all(np.isfinite(np.asarray(out2_bf16)))
    np.testing.assert_allclose(np.asarray(out2_bf16), np.asarray(ref2),
                               rtol=1e-1, atol=1e-1)

    print("KERNEL_OK")
</pallas_src>

<mosaic_0001>
module attributes {stable_mosaic.version = 11 : i64} {
  func.func @_octree_swin_attn_kernel(%arg0: i32, %arg1: memref<64x32xf32, #tpu.memory_space<vmem>>, %arg2: memref<8x8xi32, #tpu.memory_space<vmem>>, %arg3: memref<8x8xi32, #tpu.memory_space<vmem>>, %arg4: memref<32x96xf32, #tpu.memory_space<vmem>>, %arg5: memref<1x96xf32, #tpu.memory_space<vmem>>, %arg6: memref<32x32xf32, #tpu.memory_space<vmem>>, %arg7: memref<1x32xf32, #tpu.memory_space<vmem>>, %arg8: memref<64x32xf32, #tpu.memory_space<vmem>>, %arg9: memref<64x32xf32, #tpu.memory_space<vmem>>) attributes {dimension_semantics = [#tpu.dimension_semantics<parallel>], iteration_bounds = array<i64: 1>, scalar_prefetch = 0 : i64, scratch_operands = 1 : i64, tpu.core_type = #tpu.core_type<tc>, window_params = [{transform_indices = @transform_0, window_bounds = array<i64: 64, 32>}, {transform_indices = @transform_1, window_bounds = array<i64: 8, 8>}, {transform_indices = @transform_2, window_bounds = array<i64: 8, 8>}, {pipeline_mode = #tpu.pipeline_mode<synchronous>, transform_indices = @transform_3, window_bounds = array<i64: 32, 96>}, {pipeline_mode = #tpu.pipeline_mode<synchronous>, transform_indices = @transform_4, window_bounds = array<i64: 1, 96>}, {pipeline_mode = #tpu.pipeline_mode<synchronous>, transform_indices = @transform_5, window_bounds = array<i64: 32, 32>}, {pipeline_mode = #tpu.pipeline_mode<synchronous>, transform_indices = @transform_6, window_bounds = array<i64: 1, 32>}, {transform_indices = @transform_7, window_bounds = array<i64: 64, 32>}]} {
    %c0 = arith.constant 0 : index
    %c0_0 = arith.constant 0 : index
    %0 = vector.load %arg1[%c0, %c0_0] : memref<64x32xf32, #tpu.memory_space<vmem>>, vector<64x32xf32>
    %c0_1 = arith.constant 0 : index
    %c0_2 = arith.constant 0 : index
    %1 = vector.load %arg4[%c0_1, %c0_2] : memref<32x96xf32, #tpu.memory_space<vmem>>, vector<32x96xf32>
    %cst = arith.constant dense<0.000000e+00> : vector<64x96xf32>
    %2 = tpu.matmul %0, %1, %cst {dimension_numbers = #tpu.dot_dimension_numbers<[1], [0], [0], [1], [0, 0, 1, 1], [], []>} : vector<64x32xf32>, vector<32x96xf32>, vector<64x96xf32> -> vector<64x96xf32>
    %c0_3 = arith.constant 0 : index
    %c0_4 = arith.constant 0 : index
    %3 = vector.load %arg5[%c0_3, %c0_4] : memref<1x96xf32, #tpu.memory_space<vmem>>, vector<1x96xf32>
    %4 = vector.broadcast %3 : vector<1x96xf32> to vector<64x96xf32>
    %5 = arith.addf %2, %4 : vector<64x96xf32>
    %c0_5 = arith.constant 0 : index
    %c0_6 = arith.constant 0 : index
    %6 = vector.load %arg2[%c0_5, %c0_6] : memref<8x8xi32, #tpu.memory_space<vmem>>, vector<8x8xi32>
    %c0_7 = arith.constant 0 : index
    %c0_8 = arith.constant 0 : index
    %7 = vector.load %arg3[%c0_7, %c0_8] : memref<8x8xi32, #tpu.memory_space<vmem>>, vector<8x8xi32>
    %8 = vector.shape_cast %6 : vector<8x8xi32> to vector<8x8x1xi32>
    %9 = vector.shape_cast %6 : vector<8x8xi32> to vector<8x1x8xi32>
    %10 = vector.shape_cast %7 : vector<8x8xi32> to vector<8x8x1xi32>
    %11 = vector.shape_cast %7 : vector<8x8xi32> to vector<8x1x8xi32>
    %c-1_i32 = arith.constant -1 : i32
    %12 = vector.broadcast %c-1_i32 : i32 to vector<8x8x1xi32>
    %13 = arith.cmpi eq, %8, %12 : vector<8x8x1xi32>
    %c-1_i32_9 = arith.constant -1 : i32
    %14 = vector.broadcast %c-1_i32_9 : i32 to vector<8x1x8xi32>
    %15 = arith.cmpi eq, %9, %14 : vector<8x1x8xi32>
    %16 = vector.broadcast %13 : vector<8x8x1xi1> to vector<8x8x8xi1>
    %17 = vector.broadcast %15 : vector<8x1x8xi1> to vector<8x8x8xi1>
    %18 = arith.ori %16, %17 : vector<8x8x8xi1>
    %c-1_i32_10 = arith.constant -1 : i32
    %19 = vector.broadcast %c-1_i32_10 : i32 to vector<8x8x1xi32>
    %20 = arith.cmpi eq, %10, %19 : vector<8x8x1xi32>
    %21 = vector.broadcast %20 : vector<8x8x1xi1> to vector<8x8x8xi1>
    %22 = arith.ori %18, %21 : vector<8x8x8xi1>
    %c-1_i32_11 = arith.constant -1 : i32
    %23 = vector.broadcast %c-1_i32_11 : i32 to vector<8x1x8xi32>
    %24 = arith.cmpi eq, %11, %23 : vector<8x1x8xi32>
    %25 = vector.broadcast %24 : vector<8x1x8xi1> to vector<8x8x8xi1>
    %26 = arith.ori %22, %25 : vector<8x8x8xi1>
    %27 = vector.broadcast %8 : vector<8x8x1xi32> to vector<8x8x8xi32>
    %28 = vector.broadcast %9 : vector<8x1x8xi32> to vector<8x8x8xi32>
    %29 = arith.cmpi ne, %27, %28 : vector<8x8x8xi32>
    %30 = vector.broadcast %10 : vector<8x8x1xi32> to vector<8x8x8xi32>
    %31 = vector.broadcast %11 : vector<8x1x8xi32> to vector<8x8x8xi32>
    %32 = arith.cmpi slt, %30, %31 : vector<8x8x8xi32>
    %33 = arith.ori %29, %32 : vector<8x8x8xi1>
    %34 = arith.ori %33, %26 : vector<8x8x8xi1>
    %cst_12 = arith.constant -1.000000e+03 : f32
    %cst_13 = arith.constant 0.000000e+00 : f32
    %35 = vector.broadcast %cst_12 : f32 to vector<8x8x8xf32>
    %36 = vector.broadcast %cst_13 : f32 to vector<8x8x8xf32>
    %37 = arith.select %34, %35, %36 : vector<8x8x8xi1>, vector<8x8x8xf32>
    %38 = vector.extract_strided_slice %5 {offsets = [0, 0], sizes = [64, 8], strides = [1, 1]} : vector<64x96xf32> to vector<64x8xf32>
    %39 = vector.shape_cast %38 : vector<64x8xf32> to vector<8x8x8xf32>
    %40 = vector.extract_strided_slice %5 {offsets = [0, 32], sizes = [64, 8], strides = [1, 1]} : vector<64x96xf32> to vector<64x8xf32>
    %41 = vector.shape_cast %40 : vector<64x8xf32> to vector<8x8x8xf32>
    %42 = vector.extract_strided_slice %5 {offsets = [0, 64], sizes = [64, 8], strides = [1, 1]} : vector<64x96xf32> to vector<64x8xf32>
    %43 = vector.shape_cast %42 : vector<64x8xf32> to vector<8x8x8xf32>
    "tpu.trace_start"() <{level = 10 : i32, message = "pkd,pjd->pkj"}> : () -> ()
    %cst_14 = arith.constant dense<0.000000e+00> : vector<8x8x8xf32>
    %44 = tpu.matmul %39, %41, %cst_14 {dimension_numbers = #tpu.dot_dimension_numbers<[2], [2], [1], [1], [0, 0, 0, 1, 1, 1], [0], [0]>} : vector<8x8x8xf32>, vector<8x8x8xf32>, vector<8x8x8xf32> -> vector<8x8x8xf32>
    "tpu.trace_stop"() : () -> ()
    %45 = arith.addf %44, %37 : vector<8x8x8xf32>
    %cst_15 = arith.constant dense<0xFF800000> : vector<8x8xf32>
    %46 = vector.multi_reduction <maximumf>, %45, %cst_15 [2] : vector<8x8x8xf32> to vector<8x8xf32>
    %47 = vector.shape_cast %46 : vector<8x8xf32> to vector<8x8x1xf32>
    %48 = vector.broadcast %47 : vector<8x8x1xf32> to vector<8x8x8xf32>
    %49 = arith.subf %45, %48 : vector<8x8x8xf32>
    %50 = math.exp %49 : vector<8x8x8xf32>
    %cst_16 = arith.constant dense<0.000000e+00> : vector<8x8xf32>
    %51 = vector.multi_reduction <add>, %50, %cst_16 [2] : vector<8x8x8xf32> to vector<8x8xf32>
    %52 = vector.shape_cast %51 : vector<8x8xf32> to vector<8x8x1xf32>
    %53 = vector.broadcast %52 : vector<8x8x1xf32> to vector<8x8x8xf32>
    %54 = arith.divf %50, %53 : vector<8x8x8xf32>
    "tpu.trace_start"() <{level = 10 : i32, message = "pkj,pjd->pkd"}> : () -> ()
    %cst_17 = arith.constant dense<0.000000e+00> : vector<8x8x8xf32>
    %55 = tpu.matmul %54, %43, %cst_17 {dimension_numbers = #tpu.dot_dimension_numbers<[2], [1], [1], [2], [0, 0, 0, 1, 1, 2], [0], [0]>} : vector<8x8x8xf32>, vector<8x8x8xf32>, vector<8x8x8xf32> -> vector<8x8x8xf32>
    "tpu.trace_stop"() : () -> ()
    %56 = vector.shape_cast %55 : vector<8x8x8xf32> to vector<64x8xf32>
    %c0_18 = arith.constant 0 : index
    %c0_19 = arith.constant 0 : index
    %57 = vector.load %arg9[%c0_18, %c0_19] : memref<64x32xf32, #tpu.memory_space<vmem>>, vector<64x8xf32>
    tpu.vector_store %arg9[%c0_18, %c0_19], %56 {strides = array<i32>} : memref<64x32xf32, #tpu.memory_space<vmem>>, vector<64x8xf32>,
    %58 = vector.extract_strided_slice %5 {offsets = [0, 8], sizes = [64, 8], strides = [1, 1]} : vector<64x96xf32> to vector<64x8xf32>
    %59 = vector.shape_cast %58 : vector<64x8xf32> to vector<8x8x8xf32>
    %60 = vector.extract_strided_slice %5 {offsets = [0, 40], sizes = [64, 8], strides = [1, 1]} : vector<64x96xf32> to vector<64x8xf32>
    %61 = vector.shape_cast %60 : vector<64x8xf32> to vector<8x8x8xf32>
    %62 = vector.extract_strided_slice %5 {offsets = [0, 72], sizes = [64, 8], strides = [1, 1]} : vector<64x96xf32> to vector<64x8xf32>
    %63 = vector.shape_cast %62 : vector<64x8xf32> to vector<8x8x8xf32>
    "tpu.trace_start"() <{level = 10 : i32, message = "pkd,pjd->pkj"}> : () -> ()
    %cst_20 = arith.constant dense<0.000000e+00> : vector<8x8x8xf32>
    %64 = tpu.matmul %59, %61, %cst_20 {dimension_numbers = #tpu.dot_dimension_numbers<[2], [2], [1], [1], [0, 0, 0, 1, 1, 1], [0], [0]>} : vector<8x8x8xf32>, vector<8x8x8xf32>, vector<8x8x8xf32> -> vector<8x8x8xf32>
    "tpu.trace_stop"() : () -> ()
    %65 = arith.addf %64, %37 : vector<8x8x8xf32>
    %cst_21 = arith.constant dense<0xFF800000> : vector<8x8xf32>
    %66 = vector.multi_reduction <maximumf>, %65, %cst_21 [2] : vector<8x8x8xf32> to vector<8x8xf32>
    %67 = vector.shape_cast %66 : vector<8x8xf32> to vector<8x8x1xf32>
    %68 = vector.broadcast %67 : vector<8x8x1xf32> to vector<8x8x8xf32>
    %69 = arith.subf %65, %68 : vector<8x8x8xf32>
    %70 = math.exp %69 : vector<8x8x8xf32>
    %cst_22 = arith.constant dense<0.000000e+00> : vector<8x8xf32>
    %71 = vector.multi_reduction <add>, %70, %cst_22 [2] : vector<8x8x8xf32> to vector<8x8xf32>
    %72 = vector.shape_cast %71 : vector<8x8xf32> to vector<8x8x1xf32>
    %73 = vector.broadcast %72 : vector<8x8x1xf32> to vector<8x8x8xf32>
    %74 = arith.divf %70, %73 : vector<8x8x8xf32>
    "tpu.trace_start"() <{level = 10 : i32, message = "pkj,pjd->pkd"}> : () -> ()
    %cst_23 = arith.constant dense<0.000000e+00> : vector<8x8x8xf32>
    %75 = tpu.matmul %74, %63, %cst_23 {dimension_numbers = #tpu.dot_dimension_numbers<[2], [1], [1], [2], [0, 0, 0, 1, 1, 2], [0], [0]>} : vector<8x8x8xf32>, vector<8x8x8xf32>, vector<8x8x8xf32> -> vector<8x8x8xf32>
    "tpu.trace_stop"() : () -> ()
    %76 = vector.shape_cast %75 : vector<8x8x8xf32> to vector<64x8xf32>
    %c0_24 = arith.constant 0 : index
    %c8 = arith.constant 8 : index
    %77 = vector.load %arg9[%c0_24, %c8] : memref<64x32xf32, #tpu.memory_space<vmem>>, vector<64x8xf32>
    tpu.vector_store %arg9[%c0_24, %c8], %76 {strides = array<i32>} : memref<64x32xf32, #tpu.memory_space<vmem>>, vector<64x8xf32>,
    %78 = vector.extract_strided_slice %5 {offsets = [0, 16], sizes = [64, 8], strides = [1, 1]} : vector<64x96xf32> to vector<64x8xf32>
    %79 = vector.shape_cast %78 : vector<64x8xf32> to vector<8x8x8xf32>
    %80 = vector.extract_strided_slice %5 {offsets = [0, 48], sizes = [64, 8], strides = [1, 1]} : vector<64x96xf32> to vector<64x8xf32>
    %81 = vector.shape_cast %80 : vector<64x8xf32> to vector<8x8x8xf32>
    %82 = vector.extract_strided_slice %5 {offsets = [0, 80], sizes = [64, 8], strides = [1, 1]} : vector<64x96xf32> to vector<64x8xf32>
    %83 = vector.shape_cast %82 : vector<64x8xf32> to vector<8x8x8xf32>
    "tpu.trace_start"() <{level = 10 : i32, message = "pkd,pjd->pkj"}> : () -> ()
    %cst_25 = arith.constant dense<0.000000e+00> : vector<8x8x8xf32>
    %84 = tpu.matmul %79, %81, %cst_25 {dimension_numbers = #tpu.dot_dimension_numbers<[2], [2], [1], [1], [0, 0, 0, 1, 1, 1], [0], [0]>} : vector<8x8x8xf32>, vector<8x8x8xf32>, vector<8x8x8xf32> -> vector<8x8x8xf32>
    "tpu.trace_stop"() : () -> ()
    %85 = arith.addf %84, %37 : vector<8x8x8xf32>
    %cst_26 = arith.constant dense<0xFF800000> : vector<8x8xf32>
    %86 = vector.multi_reduction <maximumf>, %85, %cst_26 [2] : vector<8x8x8xf32> to vector<8x8xf32>
    %87 = vector.shape_cast %86 : vector<8x8xf32> to vector<8x8x1xf32>
    %88 = vector.broadcast %87 : vector<8x8x1xf32> to vector<8x8x8xf32>
    %89 = arith.subf %85, %88 : vector<8x8x8xf32>
    %90 = math.exp %89 : vector<8x8x8xf32>
    %cst_27 = arith.constant dense<0.000000e+00> : vector<8x8xf32>
    %91 = vector.multi_reduction <add>, %90, %cst_27 [2] : vector<8x8x8xf32> to vector<8x8xf32>
    %92 = vector.shape_cast %91 : vector<8x8xf32> to vector<8x8x1xf32>
    %93 = vector.broadcast %92 : vector<8x8x1xf32> to vector<8x8x8xf32>
    %94 = arith.divf %90, %93 : vector<8x8x8xf32>
    "tpu.trace_start"() <{level = 10 : i32, message = "pkj,pjd->pkd"}> : () -> ()
    %cst_28 = arith.constant dense<0.000000e+00> : vector<8x8x8xf32>
    %95 = tpu.matmul %94, %83, %cst_28 {dimension_numbers = #tpu.dot_dimension_numbers<[2], [1], [1], [2], [0, 0, 0, 1, 1, 2], [0], [0]>} : vector<8x8x8xf32>, vector<8x8x8xf32>, vector<8x8x8xf32> -> vector<8x8x8xf32>
    "tpu.trace_stop"() : () -> ()
    %96 = vector.shape_cast %95 : vector<8x8x8xf32> to vector<64x8xf32>
    %c0_29 = arith.constant 0 : index
    %c16 = arith.constant 16 : index
    %97 = vector.load %arg9[%c0_29, %c16] : memref<64x32xf32, #tpu.memory_space<vmem>>, vector<64x8xf32>
    tpu.vector_store %arg9[%c0_29, %c16], %96 {strides = array<i32>} : memref<64x32xf32, #tpu.memory_space<vmem>>, vector<64x8xf32>,
    %98 = vector.extract_strided_slice %5 {offsets = [0, 24], sizes = [64, 8], strides = [1, 1]} : vector<64x96xf32> to vector<64x8xf32>
    %99 = vector.shape_cast %98 : vector<64x8xf32> to vector<8x8x8xf32>
    %100 = vector.extract_strided_slice %5 {offsets = [0, 56], sizes = [64, 8], strides = [1, 1]} : vector<64x96xf32> to vector<64x8xf32>
    %101 = vector.shape_cast %100 : vector<64x8xf32> to vector<8x8x8xf32>
    %102 = vector.extract_strided_slice %5 {offsets = [0, 88], sizes = [64, 8], strides = [1, 1]} : vector<64x96xf32> to vector<64x8xf32>
    %103 = vector.shape_cast %102 : vector<64x8xf32> to vector<8x8x8xf32>
    "tpu.trace_start"() <{level = 10 : i32, message = "pkd,pjd->pkj"}> : () -> ()
    %cst_30 = arith.constant dense<0.000000e+00> : vector<8x8x8xf32>
    %104 = tpu.matmul %99, %101, %cst_30 {dimension_numbers = #tpu.dot_dimension_numbers<[2], [2], [1], [1], [0, 0, 0, 1, 1, 1], [0], [0]>} : vector<8x8x8xf32>, vector<8x8x8xf32>, vector<8x8x8xf32> -> vector<8x8x8xf32>
    "tpu.trace_stop"() : () -> ()
    %105 = arith.addf %104, %37 : vector<8x8x8xf32>
    %cst_31 = arith.constant dense<0xFF800000> : vector<8x8xf32>
    %106 = vector.multi_reduction <maximumf>, %105, %cst_31 [2] : vector<8x8x8xf32> to vector<8x8xf32>
    %107 = vector.shape_cast %106 : vector<8x8xf32> to vector<8x8x1xf32>
    %108 = vector.broadcast %107 : vector<8x8x1xf32> to vector<8x8x8xf32>
    %109 = arith.subf %105, %108 : vector<8x8x8xf32>
    %110 = math.exp %109 : vector<8x8x8xf32>
    %cst_32 = arith.constant dense<0.000000e+00> : vector<8x8xf32>
    %111 = vector.multi_reduction <add>, %110, %cst_32 [2] : vector<8x8x8xf32> to vector<8x8xf32>
    %112 = vector.shape_cast %111 : vector<8x8xf32> to vector<8x8x1xf32>
    %113 = vector.broadcast %112 : vector<8x8x1xf32> to vector<8x8x8xf32>
    %114 = arith.divf %110, %113 : vector<8x8x8xf32>
    "tpu.trace_start"() <{level = 10 : i32, message = "pkj,pjd->pkd"}> : () -> ()
    %cst_33 = arith.constant dense<0.000000e+00> : vector<8x8x8xf32>
    %115 = tpu.matmul %114, %103, %cst_33 {dimension_numbers = #tpu.dot_dimension_numbers<[2], [1], [1], [2], [0, 0, 0, 1, 1, 2], [0], [0]>} : vector<8x8x8xf32>, vector<8x8x8xf32>, vector<8x8x8xf32> -> vector<8x8x8xf32>
    "tpu.trace_stop"() : () -> ()
    %116 = vector.shape_cast %115 : vector<8x8x8xf32> to vector<64x8xf32>
    %c0_34 = arith.constant 0 : index
    %c24 = arith.constant 24 : index
    %117 = vector.load %arg9[%c0_34, %c24] : memref<64x32xf32, #tpu.memory_space<vmem>>, vector<64x8xf32>
    tpu.vector_store %arg9[%c0_34, %c24], %116 {strides = array<i32>} : memref<64x32xf32, #tpu.memory_space<vmem>>, vector<64x8xf32>,
    %c0_35 = arith.constant 0 : index
    %c0_36 = arith.constant 0 : index
    %118 = vector.load %arg9[%c0_35, %c0_36] : memref<64x32xf32, #tpu.memory_space<vmem>>, vector<64x32xf32>
    %c0_37 = arith.constant 0 : index
    %c0_38 = arith.constant 0 : index
    %119 = vector.load %arg6[%c0_37, %c0_38] : memref<32x32xf32, #tpu.memory_space<vmem>>, vector<32x32xf32>
    %cst_39 = arith.constant dense<0.000000e+00> : vector<64x32xf32>
    %120 = tpu.matmul %118, %119, %cst_39 {dimension_numbers = #tpu.dot_dimension_numbers<[1], [0], [0], [1], [0, 0, 1, 1], [], []>} : vector<64x32xf32>, vector<32x32xf32>, vector<64x32xf32> -> vector<64x32xf32>
    %c0_40 = arith.constant 0 : index
    %c0_41 = arith.constant 0 : index
    %121 = vector.load %arg7[%c0_40, %c0_41] : memref<1x32xf32, #tpu.memory_space<vmem>>, vector<1x32xf32>
    %122 = vector.broadcast %121 : vector<1x32xf32> to vector<64x32xf32>
    %123 = arith.addf %120, %122 : vector<64x32xf32>
    %c0_42 = arith.constant 0 : index
    %c0_43 = arith.constant 0 : index
    %124 = vector.load %arg8[%c0_42, %c0_43] : memref<64x32xf32, #tpu.memory_space<vmem>>, vector<64x32xf32>
    tpu.vector_store %arg8[%c0_42, %c0_43], %123 {strides = array<i32>} : memref<64x32xf32, #tpu.memory_space<vmem>>, vector<64x32xf32>,
    return
  }
  func.func @transform_0(%arg0: i32) -> (i32, i32) {
    %c0_i32 = arith.constant 0 : i32
    %c0_i32_0 = arith.constant 0 : i32
    return %arg0, %c0_i32 : i32, i32
  }
  func.func @transform_1(%arg0: i32) -> (i32, i32) {
    %c0_i32 = arith.constant 0 : i32
    %c0_i32_0 = arith.constant 0 : i32
    return %arg0, %c0_i32 : i32, i32
  }
  func.func @transform_2(%arg0: i32) -> (i32, i32) {
    %c0_i32 = arith.constant 0 : i32
    %c0_i32_0 = arith.constant 0 : i32
    return %arg0, %c0_i32 : i32, i32
  }
  func.func @transform_3(%arg0: i32) -> (i32, i32) {
    %c0_i32 = arith.constant 0 : i32
    %c0_i32_0 = arith.constant 0 : i32
    %c0_i32_1 = arith.constant 0 : i32
    return %c0_i32, %c0_i32_0 : i32, i32
  }
  func.func @transform_4(%arg0: i32) -> (i32, i32) {
    %c0_i32 = arith.constant 0 : i32
    %c0_i32_0 = arith.constant 0 : i32
    %c0_i32_1 = arith.constant 0 : i32
    return %c0_i32, %c0_i32_0 : i32, i32
  }
  func.func @transform_5(%arg0: i32) -> (i32, i32) {
    %c0_i32 = arith.constant 0 : i32
    %c0_i32_0 = arith.constant 0 : i32
    %c0_i32_1 = arith.constant 0 : i32
    return %c0_i32, %c0_i32_0 : i32, i32
  }
  func.func @transform_6(%arg0: i32) -> (i32, i32) {
    %c0_i32 = arith.constant 0 : i32
    %c0_i32_0 = arith.constant 0 : i32
    %c0_i32_1 = arith.constant 0 : i32
    return %c0_i32, %c0_i32_0 : i32, i32
  }
  func.func @transform_7(%arg0: i32) -> (i32, i32) {
    %c0_i32 = arith.constant 0 : i32
    %c0_i32_0 = arith.constant 0 : i32
    return %arg0, %c0_i32 : i32, i32
  }
}

</mosaic_0001>

<bundles_post_ra>
// kernel: tpu_custom_call.1
= control target key start
LH: loop header
LB: loop body
LE: loop exit
PB: predicated region body
PF: predicated region fallthrough
CT: control target
= control target key end

     0   :  { %vm8528_vm0 = vcmask 261120   ;;  %v7029_v14 = vmov 0.0   ;;  %vm8529_vm1 = vmmov 0   ;;  %v177_v28 = vlaneseq  ;;  %s7036_s29 = smov 120   ;;  %s7037_s30 = smov 56   ;;  %s8520_s3 = inlined_call_operand.vmem [shape: f32[32,96], index: 3, kind: input, shape index: {}]   ;;  %s8521_s0 = inlined_call_operand.vmem [shape: f32[64,32], index: 0, kind: input, shape index: {}]   ;;  %s8522_s4 = inlined_call_operand.vmem [shape: f32[1,96], index: 4, kind: input, shape index: {}]   ;;  %s8523_s1 = inlined_call_operand.vmem [shape: s32[8,8], index: 1, kind: input, shape index: {}]   ;;  %s8524_s2 = inlined_call_operand.vmem [shape: s32[8,8], index: 2, kind: input, shape index: {}]   ;;  %s8525_s5 = inlined_call_operand.vmem [shape: f32[32,32], index: 5, kind: input, shape index: {}]   ;;  %s8526_s6 = inlined_call_operand.vmem [shape: f32[1,32], index: 6, kind: input, shape index: {}]   ;;  %s8527_s7 = inlined_call_operand.vmem [shape: f32[64,32], index: 7, kind: output, shape index: {}]  }
   0x1   :  { %v34_v0 = vld [vmem:[%s8520_s3] sm:$0xff]  ;;  %v35_v1 = vld [vmem:[%s8520_s3 + $0x8] sm:$0xff]  ;;  %v36_v2 = vld [vmem:[%s8520_s3 + $0x10] sm:$0xff]  ;;  %6535 = vmatprep.subr.mxu1 %v7029_v14  ;;  %6537 = vmatprep.mubr.msk.f32.mxu1 %vm8529_vm1, %v7029_v14  ;;  %v7032_v29 = vmov 1966171168   ;;  %vm8531_vm2 = vcmask 64512  }
   0x2   :  { %v6865_v3 = vpack.c.bf16 %v35_v1, %v34_v0  ;;  %v37_v4 = vld [vmem:[%s8520_s3 + $0x18] sm:$0xff]  ;;  %v26_v5 = vld [vmem:[%s8521_s0] sm:$0xff]  ;;  %v27_v7 = vld [vmem:[%s8521_s0 + $0x8] sm:$0xff]  ;;  %v235_v30 = vunpack.c.l.s4 %v7032_v29  ;;  %v178_v32 = vshrl.u32 %v177_v28, 7  ;;  %s7038_s8 = smov 80   ;;  %s7039_s9 = smov 112  }
   0x3   :  { %v6869_v6 = vpack.c.bf16 %v37_v4, %v36_v2  ;;  %6513 = vmatprep.mubr.msk.f32.mxu0 %vm8528_vm0, %v26_v5  ;;  %v28_v8 = vld [vmem:[%s8521_s0 + $0x10] sm:$0xff]  ;;  %v29_v9 = vld [vmem:[%s8521_s0 + $0x18] sm:$0xff]  ;;  %v30_v10 = vld [vmem:[%s8521_s0 + $0x20] sm:$0xff]  ;;  %s7040_s10 = smov 48   ;;  %s7041_s11 = smov 72  }
   0x4   :  { %6866 = vmatprep.subr.bf16.mxu0 %v6865_v3  ;;  %v31_v11 = vld [vmem:[%s8521_s0 + $0x28] sm:$0xff]  ;;  %v32_v12 = vld [vmem:[%s8521_s0 + $0x30] sm:$0xff]  ;;  %v33_v13 = vld [vmem:[%s8521_s0 + $0x38] sm:$0xff]  ;;  %s7031_s0 = smov 96   ;;  %v7165_v37 = vsub.s32 0, %v178_v32  ;;  %v186_v38 = vsub.s32 1, %v178_v32  ;;  %v236_v39 = vunpack.c.0.s8 %v235_v30 }
   0x5   :  { %6868 = vmatpush3.bf16.msra.mxu0 %v6865_v3  ;;  %v6239_v15 = vld [vmem:[%s8522_s4] ss:$0 sm:$0xff]  ;;  %v200_v44 = vsub.s32 3, %v178_v32  ;;  %v193_v47 = vsub.s32 2, %v178_v32  ;;  %v214_v57 = vsub.s32 5, %v178_v32  ;;  %v207_v59 = vsub.s32 4, %v178_v32 }
   0x6   :  { %6870 = vmatprep.subr.bf16.mxu0 %v6869_v6  ;;  %v175_v35 = vld [vmem:[%s8523_s1] sm:$0xff]  ;;  %v7176_v45 = vsub.s32 %v236_v39, %v178_v32  ;;  %v228_v0 = vsub.s32 7, %v178_v32  ;;  %v221_v3 = vsub.s32 6, %v178_v32  ;;  %v8584_v39 = vmov 0  ;;  %s7034_s1 = smov 64   ;;  %s7042_s12 = smov 104  }
   0x7   :  { %v187_v40 = vrot.slane %v175_v35, %v186_v38  ;;  %v7172_v41 = vld [vmem:[%s8524_s2] sm:$0xff]  ;;  %v180_v42 = vrot.slane %v175_v35, %v7165_v37  ;;  %v233_v49 = vcombine.high %v175_v35, %v175_v35  ;;  %v201_v50 = vrot.slane %v175_v35, %v200_v44  ;;  %s7035_s2 = smov 88   ;;  %s7043_s13 = smov 40  }
   0x8   :  { %v292_v43 = vrot.slane %v7172_v41, %v186_v38  ;;  %v285_v46 = vrot.slane %v7172_v41, %v7165_v37  ;;  %v240_v48 = vrot.slane %v175_v35, %v7176_v45  ;;  %v194_v53 = vrot.slane %v175_v35, %v193_v47  ;;  %s7044_s14 = smov 8   ;;  %s7045_s3 = smov 16  }
   0x9   :  { %6872 = vmatpush3.bf16.msra.mxu0 %v6869_v6  ;;  %v7185_v54 = vrot.slane %v233_v49, %v7176_v45  ;;  %v306_v56 = vrot.slane %v7172_v41, %v200_v44  ;;  %v299_v58 = vrot.slane %v7172_v41, %v193_v47  ;;  %v215_v60 = vrot.slane %v175_v35, %v214_v57  ;;  %s7046_s23 = smov 24  }
   0xa   :  { %6525 = vmatprep.subr.mxu0 %v7029_v14  ;;  %v248_v51 = vcombine.high %v240_v48, %v240_v48  ;;  %v7182_v52 = vrot.slane %v240_v48, %v7176_v45  ;;  %v208_v61 = vrot.slane %v175_v35, %v207_v59  ;;  %v320_v63 = vrot.slane %v7172_v41, %v214_v57 }
   0xb   :  { %v249_v62 = vcombine.high %v7185_v54, %v7185_v54  ;;  %v313_v2 = vrot.slane %v7172_v41, %v207_v59  ;;  %v229_v4 = vrot.slane %v175_v35, %v228_v0  ;;  %v222_v5 = vrot.slane %v175_v35, %v221_v3 }
   0xc   :  { %6514 = vmatmul.mubr.msk.f32.vlgmr.msra.gmra.mrb[0].mxu0 %vm8528_vm0, %v27_v7  ;;  %v7188_v55 = vrot.slane %v248_v51, %v7176_v45  ;;  %v334_v6 = vrot.slane %v7172_v41, %v228_v0  ;;  %v327_v7 = vrot.slane %v7172_v41, %v221_v3  ;;  %vm395_vm4 = vcmp.eq.s32.totalorder %v7182_v52, 4294967295 }
   0xd   :  { %6516 = vmatprep.mubr.msk.f32.mxu0 %vm8528_vm0, %v28_v8  ;;  %v7196_v1 = vrot.slane %v249_v62, %v7176_v45  ;;  %v345_v8 = vrot.slane %v7172_v41, %v7176_v45  ;;  %v8550_v62 = vmov 0 }
   0xe   :  { %vm396_vm3 = vcmp.eq.s32.totalorder %v7188_v55, 4294967295  ;;  %v578_v44 = vrot.slane %v7188_v55, %v7165_v37 }
  0x10   :  { %6517 = vmatmul.mubr.msk.f32.gmra.mrb[2].mxu0 %vm8528_vm0, %v29_v9 }
  0x11   :  { %6519 = vmatprep.mubr.msk.f32.mxu0 %vm8528_vm0, %v30_v10 }
  0x14   :  { %6520 = vmatmul.mubr.msk.f32.gmra.mrb[4].mxu0 %vm8528_vm0, %v31_v11  ;;  %v353_v11 = vcombine.high %v345_v8, %v345_v8 }
  0x15   :  { %6522 = vmatprep.mubr.msk.f32.mxu0 %vm8528_vm0, %v32_v12 }
  0x18   :  { %6523 = vmatmul.mubr.msk.f32.gmra.mrb[6].mxu0 %vm8528_vm0, %v33_v13 }
  0x19   :  { %6527 = vmatprep.mubr.msk.f32.mxu0 %vm8529_vm1, %v7029_v14 }
  0xdf   :  { %v6515_v16 = vpop.f32.mrb[0].mxu0 }
  0xe0   :  { %v7140_v17 = vadd.f32 %v6515_v16, %v6239_v15  ;;  %v136_v18 = vpop.f32.mrb[1].mxu0 }
  0xe1   :  { %v7142_v19 = vadd.f32 %v6239_v15, %v136_v18 }
  0xe2   :  { %754 = vrot.lane.b32.xlu1 %v7140_v17, %s7031_s0 }
  0xe3   :  { %v6518_v20 = vpop.f32.mrb[2].mxu0  ;;  %676 = vrot.lane.b32.xlu0 %v7142_v19, %s7031_s0 }
  0xe4   :  { %v7146_v21 = vadd.f32 %v6518_v20, %v6239_v15  ;;  %v146_v22 = vpop.f32.mrb[3].mxu0  ;;  %v7033_v20 = vmov 0  }
  0xe5   :  { %v7148_v23 = vadd.f32 %v6239_v15, %v146_v22  ;;  %v420_v22 = vsel %vm396_vm3, 1, %v7033_v20  ;;  %v419_v28 = vsel %vm395_vm4, 1, %v7033_v20 }
  0xe6   :  { %908 = vrot.lane.b32.xlu1 %v7146_v21, %s7031_s0  ;;  %v434_v30 = vrot.slane %v420_v22, %v7165_v37  ;;  %v430_v35 = vrot.slane %v419_v28, %v7165_v37  ;;  %v8570_v28 = vmov 0 }
  0xe7   :  { %831 = vrot.lane.b32.xlu0 %v7148_v23, %s7031_s0  ;;  %v6521_v24 = vpop.f32.mrb[4].mxu0 }
  0xe8   :  { %v7152_v25 = vadd.f32 %v6521_v24, %v6239_v15  ;;  %v156_v26 = vpop.f32.mrb[5].mxu0  ;;  %v7225_v24 = vcombine.high %v7188_v55, %v7188_v55  ;;  %vm7264_vm8 = vcmp.eq.s32.totalorder %v434_v30, 1  ;;  %vm7284_vm11 = vcmp.eq.s32.totalorder %v430_v35, 1 }
  0xe9   :  { %v7154_v27 = vadd.f32 %v6239_v15, %v156_v26  ;;  %v7231_v26 = vrot.slane %v345_v8, %v7176_v45 }
  0xea   :  { %1062 = vrot.lane.b32.xlu1 %v7152_v25, %s7031_s0  ;;  %vm398_vm6 = vcmp.eq.s32.totalorder %v7225_v24, 4294967295 }
  0xeb   :  { %985 = vrot.lane.b32.xlu0 %v7154_v27, %s7031_s0  ;;  %v6524_v31 = vpop.f32.mrb[6].mxu0  ;;  %vm507_vm7 = vcmp.eq.s32.totalorder %v7231_v26, 4294967295 }
  0xec   :  { %v7158_v33 = vadd.f32 %v6524_v31, %v6239_v15  ;;  %v166_v34 = vpop.f32.mrb[7].mxu0  ;;  %v7243_v31 = vcombine.high %v7182_v52, %v7182_v52  ;;  %v515_v48 = vsel %vm507_vm7, 1, %v7033_v20 }
  0xed   :  { %v7163_v36 = vadd.f32 %v6239_v15, %v166_v34  ;;  %v7211_v15 = vrot.slane %v353_v11, %v7176_v45  ;;  %v526_v59 = vrot.slane %v515_v48, %v7165_v37 }
  0xee   :  { %1216 = vrot.lane.b32.xlu1 %v7158_v33, %s7031_s0  ;;  %vm397_vm9 = vcmp.eq.s32.totalorder %v7243_v31, 4294967295  ;;  %v582_v22 = vrot.slane %v7243_v31, %v7165_v37 }
  0xef   :  { %1139 = vrot.lane.b32.xlu0 %v7163_v36, %s7031_s0  ;;  %vm508_vm5 = vcmp.eq.s32.totalorder %v7211_v15, 4294967295  ;;  %v7258_v38 = vcombine.high %v7211_v15, %v7211_v15  ;;  %v421_v55 = vsel %vm397_vm9, 1, %v7033_v20 }
  0xf0   :  { %v516_v34 = vsel %vm508_vm5, 1, %v7033_v20  ;;  %v438_v3 = vrot.slane %v421_v55, %v7165_v37 }
  0xf1   :  { %vm510_vm13 = vcmp.eq.s32.totalorder %v7258_v38, 4294967295  ;;  %v626_v8 = vrot.slane %v7258_v38, %v7165_v37 }
  0xf2   :  { %189 = vbcast.lane.b32.xlu1 %v187_v40, 256  ;;  %v518_v0 = vsel %vm510_vm13, 1, %v7033_v20  ;;  %vm7354_vm13 = vcmp.eq.s32.totalorder %v526_v59, 1 }
  0xf3   :  { %182 = vbcast.lane.b32.xlu0 %v180_v42, 256  ;;  %v530_v42 = vrot.slane %v516_v34, %v7165_v37 }
  0xf5   :  { %vm7304_vm15 = vcmp.eq.s32.totalorder %v530_v42, 1 }
  0xf6   :  { %294 = vbcast.lane.b32.xlu1 %v292_v43, 256  ;;  %v422_v43 = vsel %vm398_vm6, 1, %v7033_v20 }
  0xf7   :  { %287 = vbcast.lane.b32.xlu0 %v285_v46, 256  ;;  %v618_v46 = vrot.slane %v7211_v15, %v7165_v37  ;;  %v8610_v15 = vmov 0 }
  0xfa   :  { %203 = vbcast.lane.b32.xlu1 %v201_v50, 256  ;;  %v383_v50 = vcombine.high %v7231_v26, %v7231_v26 }
  0xfb   :  { %196 = vbcast.lane.b32.xlu0 %v194_v53, 256  ;;  %v442_v53 = vrot.slane %v422_v43, %v7165_v37 }
  0xfc   :  { %vm509_vm9 = vcmp.eq.s32.totalorder %v383_v50, 4294967295 }
  0xfe   :  { %308 = vbcast.lane.b32.xlu1 %v306_v56, 256 }
  0xff   :  { %301 = vbcast.lane.b32.xlu0 %v299_v58, 256  ;;  %v574_v58 = vrot.slane %v7182_v52, %v7165_v37 }
 0x102   :  { %217 = vbcast.lane.b32.xlu1 %v215_v60, 256  ;;  %v614_v60 = vrot.slane %v7231_v26, %v7165_v37  ;;  %v8568_v26 = vmov 0 }
 0x103   :  { %210 = vbcast.lane.b32.xlu0 %v208_v61, 256  ;;  %v8548_v61 = vmov 0 }
 0x106   :  { %322 = vbcast.lane.b32.xlu1 %v320_v63, 256 }
 0x107   :  { %315 = vbcast.lane.b32.xlu0 %v313_v2, 256  ;;  %v8554_v2 = vmov 0 }
 0x10a   :  { %231 = vbcast.lane.b32.xlu1 %v229_v4, 256  ;;  %v586_v4 = vrot.slane %v7225_v24, %v7165_v37 }
 0x10b   :  { %224 = vbcast.lane.b32.xlu0 %v222_v5, 256 }
 0x10e   :  { %336 = vbcast.lane.b32.xlu1 %v334_v6, 256 }
 0x10f   :  { %329 = vbcast.lane.b32.xlu0 %v327_v7, 256  ;;  %v538_v7 = vrot.slane %v518_v0, %v7165_v37 }
 0x154   :  { %v755_v9 = vpop.permute.xlu1 %754 }
 0x155   :  { %v677_v10 = vpop.permute.xlu0 %676 }
 0x156   :  { %6526 = vmatpush3.xpose.msk.msra.mxu0 %vm8531_vm2, %v677_v10  ;;  %v8608_v10 = vmov 0 }
 0x157   :  { %6530 = vmatprep.subr.mxu0 %v7029_v14 }
 0x158   :  { %v909_v12 = vpop.permute.xlu1 %908 }
 0x159   :  { %6528 = vmatmul.mubr.msk.f32.vlgmr.msra.gmra.mrb[8].mxu0 %vm8531_vm2, %v7142_v19  ;;  %v832_v13 = vpop.permute.xlu0 %831 }
 0x15a   :  { %6531 = vmatpush3.xpose.msk.msra.mxu0 %vm8531_vm2, %v755_v9  ;;  %6536 = vmatpush3.xpose.msk.msra.mxu1 %vm8531_vm2, %v832_v13  ;;  %v517_v13 = vsel %vm509_vm9, 1, %v7033_v20 }
 0x15b   :  { %6532 = vmatprep.mubr.msk.f32.mxu0 %vm8529_vm1, %v7029_v14  ;;  %6540 = vmatprep.subr.mxu1 %v7029_v14  ;;  %v534_v24 = vrot.slane %v517_v13, %v7165_v37 }
 0x15c   :  { %v1063_v16 = vpop.permute.xlu1 %1062  ;;  %6550 = vmatprep.subr.mxu0 %v7029_v14 }
 0x15d   :  { %6533 = vmatmul.mubr.msk.f32.vlgmr.msra.gmra.mrb[10].mxu0 %vm8531_vm2, %v7140_v17  ;;  %6538 = vmatmul.mubr.msk.f32.vlgmr.msra.gmra.mrb[0].mxu1 %vm8531_vm2, %v7148_v23  ;;  %v986_v18 = vpop.permute.xlu0 %985 }
 0x15e   :  { %6541 = vmatpush3.xpose.msk.msra.mxu1 %vm8531_vm2, %v909_v12  ;;  %6551 = vmatpush3.xpose.msk.msra.mxu0 %vm8531_vm2, %v1063_v16  ;;  %v8566_v16 = vmov 0 }
 0x15f   :  { %6542 = vmatprep.mubr.msk.f32.mxu1 %vm8529_vm1, %v7029_v14  ;;  %6552 = vmatprep.mubr.msk.f32.mxu0 %vm8529_vm1, %v7029_v14 }
 0x160   :  { %6545 = vmatprep.subr.mxu1 %v7029_v14  ;;  %v1217_v29 = vpop.permute.xlu1 %1216  ;;  %6560 = vmatprep.subr.mxu0 %v7029_v14 }
 0x161   :  { %6543 = vmatmul.mubr.msk.f32.vlgmr.msra.gmra.mrb[2].mxu1 %vm8531_vm2, %v7146_v21  ;;  %6553 = vmatmul.mubr.msk.f32.vlgmr.msra.gmra.mrb[12].mxu0 %vm8531_vm2, %v7152_v25  ;;  %v1140_v32 = vpop.permute.xlu0 %1139 }
 0x162   :  { %6546 = vmatpush3.xpose.msk.msra.mxu1 %vm8531_vm2, %v986_v18  ;;  %6547 = vmatprep.mubr.msk.f32.mxu1 %vm8529_vm1, %v7029_v14 }
 0x163   :  { %6561 = vmatpush3.xpose.msk.msra.mxu0 %vm8531_vm2, %v1217_v29  ;;  %6562 = vmatprep.mubr.msk.f32.mxu0 %vm8529_vm1, %v7029_v14  ;;  %v622_v29 = vrot.slane %v383_v50, %v7165_v37 }
 0x164   :  { %6555 = vmatprep.subr.mxu1 %v7029_v14  ;;  %v190_v40 = vpop.permute.xlu1 %189  ;;  %6570 = vmatprep.subr.mxu0 %v7029_v14 }
 0x165   :  { %6548 = vmatmul.mubr.msk.f32.vlgmr.msra.gmra.mrb[4].mxu1 %vm8531_vm2, %v7154_v27  ;;  %vm388_vm10 = vcmp.eq.s32.totalorder %v190_v40, 4294967295  ;;  %v183_v47 = vpop.permute.xlu0 %182  ;;  %vm7317_vm3 = vcmp.ne.s32.totalorder %v190_v40, %v578_v44  ;;  %v338_v44 = vcombine.high %v7172_v41, %v7172_v41  ;;  %v8592_v41 = vmov 0 }
 0x166   :  { %6563 = vmatmul.mubr.msk.f32.vlgmr.msra.gmra.mrb[14].mxu0 %vm8531_vm2, %v7158_v33  ;;  %6556 = vmatpush3.xpose.msk.msra.mxu1 %vm8531_vm2, %v1140_v32  ;;  %vm387_vm12 = vcmp.eq.s32.totalorder %v183_v47, 4294967295  ;;  %vm7295_vm14 = vmor %vm388_vm10, %vm7264_vm8  ;;  %v8549_v61 = vsel %vm7317_vm3, 4294967295, %v8548_v61  ;;  %v8572_v32 = vmov 0 }
 0x167   :  { %6557 = vmatprep.mubr.msk.f32.mxu1 %vm8529_vm1, %v7029_v14  ;;  %6565 = vmatprep.subr.mxu1 %v7029_v14  ;;  %vm7328_vm6 = vmor %vm387_vm12, %vm7284_vm11  ;;  %vm462_vm11 = vcmp.eq.s32.totalorder %v442_v53, 1  ;;  %vm461_vm12 = vcmp.eq.s32.totalorder %v438_v3, 1  ;;  %v263_v53 = vrot.slane %v7185_v54, %v7176_v45 }
 0x168   :  { %v295_v57 = vpop.permute.xlu1 %294  ;;  %6572 = vmatprep.mubr.msk.f32.mxu0 %vm8529_vm1, %v7029_v14 }
 0x169   :  { %6558 = vmatmul.mubr.msk.f32.vlgmr.msra.gmra.mrb[6].mxu1 %vm8531_vm2, %v7163_v36  ;;  %vm476_vm4 = vcmp.eq.s32.totalorder %v295_v57, 4294967295  ;;  %vm7321_vm5 = vcmp.lt.s32.totalorder %v295_v57, %v618_v46  ;;  %v288_v63 = vpop.permute.xlu0 %287  ;;  %v352_v46 = vrot.slane %v338_v44, %v7176_v45  ;;  %v281_v57 = vcombine.high %v7196_v1, %v7196_v1 }
 0x16a   :  { %v8551_v62 = vsel %vm7321_vm5, 4294967295, %v8550_v62  ;;  %vm7337_vm7 = vmor %vm7295_vm14, %vm476_vm4  ;;  %vm475_vm8 = vcmp.eq.s32.totalorder %v288_v63, 4294967295  ;;  %6567 = vmatprep.mubr.msk.f32.mxu1 %vm8529_vm1, %v7029_v14  ;;  %vm7361_vm14 = vcmp.ne.s32.totalorder %v183_v47, %v574_v58  ;;  %vm7371_vm1 = vcmp.lt.s32.totalorder %v288_v63, %v614_v60 }
 0x16b   :  { %v8555_v2 = vsel %vm7337_vm7, 4294967295, %v8554_v2  ;;  %vm7367_vm0 = vmor %vm7328_vm6, %vm475_vm8  ;;  %vm7388_vm5 = vcmp.eq.s32.totalorder %v538_v7, 1  ;;  %v594_v47 = vrot.slane %v7196_v1, %v7165_v37  ;;  %v354_v48 = vcombine.high %v352_v46, %v352_v46 }
 0x16c   :  { %v204_v5 = vpop.permute.xlu1 %203  ;;  %v8567_v16 = vsel %vm7388_vm5, 4294967295, %v8566_v16  ;;  %v590_v60 = vrot.slane %v263_v53, %v7165_v37  ;;  %v602_v9 = vrot.slane %v281_v57, %v7165_v37 }
 0x16d   :  { %vm390_vm4 = vcmp.eq.s32.totalorder %v204_v5, 4294967295  ;;  %v197_v12 = vpop.permute.xlu0 %196  ;;  %vm7395_vm9 = vcmp.ne.s32.totalorder %v204_v5, %v586_v4  ;;  %v382_v49 = vrot.slane %v354_v48, %v7176_v45  ;;  %v368_v5 = vrot.slane %v352_v46, %v7176_v45 }
 0x16e   :  { %vm7376_vm2 = vmor %vm390_vm4, %vm462_vm11  ;;  %vm389_vm10 = vcmp.eq.s32.totalorder %v197_v12, 4294967295  ;;  %v8569_v26 = vsel %vm7395_vm9, 4294967295, %v8568_v26  ;;  %vm7422_vm7 = vcmp.ne.s32.totalorder %v197_v12, %v582_v22 }
 0x16f   :  { %vm469_vm8 = vmor %vm389_vm10, %vm461_vm12  ;;  %vm7418_vm12 = vcmp.eq.s32.totalorder %v534_v24, 1  ;;  %vm400_vm10 = vcmp.eq.s32.totalorder %v7196_v1, 4294967295  ;;  %v634_v56 = vrot.slane %v382_v49, %v7165_v37  ;;  %v8602_v1 = vmov 0 }
 0x170   :  { %v309_v18 = vpop.permute.xlu1 %308  ;;  %v424_v40 = vsel %vm400_vm10, 1, %v7033_v20  ;;  %vm8589_vm10 = vnez %v8549_v61  ;;  %v386_v6 = vcombine.high %v382_v49, %v382_v49  ;;  %v630_v11 = vrot.slane %v368_v5, %v7165_v37 }
 0x171   :  { %vm478_vm11 = vcmp.eq.s32.totalorder %v309_v18, 4294967295  ;;  %vm7399_vm4 = vcmp.lt.s32.totalorder %v309_v18, %v626_v8  ;;  %v302_v30 = vpop.permute.xlu0 %301  ;;  %v450_v42 = vrot.slane %v424_v40, %v7165_v37  ;;  %v279_v8 = vcombine.high %v263_v53, %v263_v53 }
 0x172   :  { %v8571_v28 = vsel %vm7399_vm4, 4294967295, %v8570_v28  ;;  %vm7406_vm6 = vmor %vm7376_vm2, %vm478_vm11  ;;  %vm477_vm3 = vcmp.eq.s32.totalorder %v302_v30, 4294967295  ;;  %vm7430_vm11 = vcmp.lt.s32.totalorder %v302_v30, %v622_v29  ;;  %v642_v22 = vrot.slane %v386_v6, %v7165_v37 }
 0x173   :  { %v8573_v32 = vsel %vm7406_vm6, 4294967295, %v8572_v32  ;;  %vm7426_vm2 = vmor %vm469_vm8, %vm477_vm3  ;;  %v8620_v30 = vmov 0  ;;  %v384_v35 = vcombine.high %v368_v5, %v368_v5 }
 0x174   :  { %vm8582_vm3 = vmor %vm7367_vm0, %vm7354_vm13  ;;  %v218_v43 = vpop.permute.xlu1 %217  ;;  %vm464_vm0 = vcmp.eq.s32.totalorder %v450_v42, 1 }
 0x175   :  { %vm8583_vm8 = vmor %vm7361_vm14, %vm7371_vm1  ;;  %vm392_vm13 = vcmp.eq.s32.totalorder %v218_v43, 4294967295  ;;  %vm8586_vm1 = vnez %v8555_v2  ;;  %v211_v51 = vpop.permute.xlu0 %210  ;;  %vm7481_vm6 = vcmp.ne.s32.totalorder %v218_v43, %v594_v47  ;;  %v598_v43 = vrot.slane %v279_v8, %v7165_v37 }
 0x176   :  { %vm7452_vm4 = vmor %vm8583_vm8, %vm8582_vm3  ;;  %vm8590_vm8 = vnez %v8551_v62  ;;  %v638_v47 = vrot.slane %v384_v35, %v7165_v37 }
 0x177   :  { %v8585_v39 = vsel %vm7452_vm4, 4294967295, %v8584_v39  ;;  %vm8587_vm14 = vmmov %vm7304_vm15 }
 0x178   :  { %vm8588_vm3 = vmor %vm8586_vm1, %vm8587_vm14  ;;  %v323_v50 = vpop.permute.xlu1 %322  ;;  %vm512_vm1 = vcmp.eq.s32.totalorder %v382_v49, 4294967295 }
 0x179   :  { %vm8591_vm15 = vmor %vm8589_vm10, %vm8590_vm8  ;;  %vm480_vm5 = vcmp.eq.s32.totalorder %v323_v50, 4294967295  ;;  %v520_v58 = vsel %vm512_vm1, 1, %v7033_v20  ;;  %v316_v63 = vpop.permute.xlu0 %315  ;;  %vm511_vm10 = vcmp.eq.s32.totalorder %v368_v5, 4294967295 }
 0x17a   :  { %vm7474_vm4 = vmor %vm8591_vm15, %vm8588_vm3  ;;  %v546_v54 = vrot.slane %v520_v58, %v7165_v37  ;;  %vm402_vm3 = vcmp.eq.s32.totalorder %v281_v57, 4294967295  ;;  %vm479_vm1 = vcmp.eq.s32.totalorder %v316_v63, 4294967295  ;;  %v519_v13 = vsel %vm511_vm10, 1, %v7033_v20 }
 0x17b   :  { %v8593_v41 = vsel %vm7474_vm4, 4294967295, %v8592_v41  ;;  %vm472_vm9 = vmor %vm392_vm13, %vm464_vm0  ;;  %vm399_vm0 = vcmp.eq.s32.totalorder %v263_v53, 4294967295  ;;  %vm7495_vm13 = vcmp.lt.s32.totalorder %v323_v50, %v634_v56  ;;  %v426_v2 = vsel %vm402_vm3, 1, %v7033_v20 }
 0x17c   :  { %vm7489_vm15 = vmor %vm472_vm9, %vm480_vm5  ;;  %v423_v62 = vsel %vm399_vm0, 1, %v7033_v20  ;;  %v232_v52 = vpop.permute.xlu1 %231  ;;  %v458_v4 = vrot.slane %v426_v2, %v7165_v37  ;;  %v542_v24 = vrot.slane %v519_v13, %v7165_v37  ;;  %vm8615_vm4 = vnez %v8567_v16 }
 0x17d   :  { %vm8600_vm14 = vmor %vm7426_vm2, %vm7418_vm12  ;;  %v446_v0 = vrot.slane %v423_v62, %v7165_v37  ;;  %vm391_vm12 = vcmp.eq.s32.totalorder %v211_v51, 4294967295  ;;  %vm7520_vm2 = vcmp.eq.s32.totalorder %v546_v54, 1  ;;  %v225_v12 = vpop.permute.xlu0 %224 }
 0x17e   :  { %vm8601_vm5 = vmor %vm7422_vm7, %vm7430_vm11  ;;  %vm394_vm7 = vcmp.eq.s32.totalorder %v232_v52, 4294967295  ;;  %vm514_vm11 = vcmp.eq.s32.totalorder %v386_v6, 4294967295 }
 0x17f   :  { %vm7510_vm9 = vmor %vm8601_vm5, %vm8600_vm14  ;;  %vm463_vm8 = vcmp.eq.s32.totalorder %v446_v0, 1  ;;  %vm7530_vm14 = vcmp.ne.s32.totalorder %v211_v51, %v590_v60  ;;  %vm466_vm5 = vcmp.eq.s32.totalorder %v458_v4, 1  ;;  %v522_v18 = vsel %vm514_vm11, 1, %v7033_v20 }
 0x180   :  { %v8603_v1 = vsel %vm7510_vm9, 4294967295, %v8602_v1  ;;  %vm471_vm0 = vmor %vm391_vm12, %vm463_vm8  ;;  %v337_v45 = vpop.permute.xlu1 %336  ;;  %vm7548_vm8 = vcmp.lt.s32.totalorder %v316_v63, %v630_v11  ;;  %v554_v31 = vrot.slane %v522_v18, %v7165_v37 }
 0x181   :  { %vm7535_vm3 = vmor %vm394_vm7, %vm466_vm5  ;;  %vm401_vm7 = vcmp.eq.s32.totalorder %v279_v8, 4294967295  ;;  %vm8614_vm5 = vnez %v8573_v32  ;;  %v330_v44 = vpop.permute.xlu0 %329 }
 0x182   :  { %v8609_v10 = vsel %vm7535_vm3, 4294967295, %v8608_v10  ;;  %vm7541_vm12 = vmor %vm471_vm0, %vm479_vm1  ;;  %vm8617_vm1 = vnez %v8569_v26  ;;  %vm8618_vm0 = vnez %v8571_v28  ;;  %v425_v16 = vsel %vm401_vm7, 1, %v7033_v20 }
 0x183   :  { %v8611_v15 = vsel %vm7541_vm12, 4294967295, %v8610_v15  ;;  %vm8616_vm10 = vmor %vm8614_vm5, %vm8615_vm4  ;;  %vm482_vm12 = vcmp.eq.s32.totalorder %v337_v45, 4294967295  ;;  %vm7572_vm4 = vcmp.eq.s32.totalorder %v542_v24, 1  ;;  %v8626_v26 = vmov 0 }
 0x184   :  { %vm8619_vm9 = vmor %vm8617_vm1, %vm8618_vm0  ;;  %vm7590_vm1 = vcmp.eq.s32.totalorder %v554_v31, 1  ;;  %v454_v34 = vrot.slane %v425_v16, %v7165_v37  ;;  %vm7595_vm7 = vcmp.ne.s32.totalorder %v232_v52, %v602_v9 }
 0x185   :  { %vm7562_vm11 = vmor %vm8619_vm9, %vm8616_vm10 }
 0x186   :  { %v8621_v30 = vsel %vm7562_vm11, 4294967295, %v8620_v30  ;;  %vm655_vm3 = vmor %vm7530_vm14, %vm7548_vm8 }
 0x187   :  { %vm8624_vm9 = vmor %vm7489_vm15, %vm7520_vm2  ;;  %vm8632_vm15 = vnez %v8611_v15  ;;  %vm8635_vm2 = vnez %v8609_v10 }
 0x188   :  { %vm8625_vm5 = vmor %vm7481_vm6, %vm7495_vm13  ;;  %vm7603_vm13 = vcmp.lt.s32.totalorder %v337_v45, %v642_v22 }
 0x189   :  { %vm7586_vm10 = vmor %vm8625_vm5, %vm8624_vm9  ;;  %vm513_vm9 = vcmp.eq.s32.totalorder %v384_v35, 4294967295 }
 0x18a   :  { %v8627_v26 = vsel %vm7586_vm10, 4294967295, %v8626_v26  ;;  %vm567_vm6 = vmor %vm8632_vm15, %vm7572_vm4  ;;  %vm465_vm4 = vcmp.eq.s32.totalorder %v454_v34, 1  ;;  %vm393_vm15 = vcmp.eq.s32.totalorder %v225_v12, 4294967295  ;;  %v521_v46 = vsel %vm513_vm9, 1, %v7033_v20 }
 0x18b   :  { %vm7609_vm0 = vmor %vm8635_vm2, %vm482_vm12  ;;  %v550_v48 = vrot.slane %v521_v46, %v7165_v37  ;;  %vm609_vm10 = vcmp.ne.s32.totalorder %v225_v12, %v598_v43 }
 0x18c   :  { %vm570_vm5 = vmor %vm7609_vm0, %vm7590_vm1  ;;  %vm481_vm1 = vcmp.eq.s32.totalorder %v330_v44, 4294967295 }
 0x18d   :  { %vm658_vm12 = vmor %vm7595_vm7, %vm7603_vm13  ;;  %vm561_vm9 = vcmp.eq.s32.totalorder %v550_v48, 1  ;;  %vm649_vm7 = vcmp.lt.s32.totalorder %v330_v44, %v638_v47 }
 0x18e   :  { %vm7630_vm2 = vmor %vm655_vm3, %vm567_vm6  ;;  %vm8644_vm6 = vnez %v8585_v39 }
 0x18f   :  { %vm473_vm0 = vmor %vm393_vm15, %vm465_vm4  ;;  %v7645_v50 = vsel %vm8644_vm6, -1000.0, %v7029_v14  ;;  %vm8647_vm4 = vnez %v8593_v41  ;;  %vm8648_vm15 = vnez %v8621_v30  ;;  %v7697_v24 = vsel %vm7630_vm2, -1000.0, %v7029_v14 }
 0x190   :  { %vm7634_vm11 = vmor %vm658_vm12, %vm570_vm5  ;;  %vm8645_vm5 = vnez %v8603_v1  ;;  %v7660_v58 = vsel %vm8647_vm4, -1000.0, %v7029_v14  ;;  %v7669_v1 = vsel %vm8648_vm15, -1000.0, %v7029_v14 }
 0x191   :  { %vm505_vm13 = vmor %vm473_vm0, %vm481_vm1  ;;  %v7653_v56 = vsel %vm8645_vm5, -1000.0, %v7029_v14  ;;  %vm8651_vm0 = vnez %v8627_v26  ;;  %v7685_v9 = vsel %vm7634_vm11, -1000.0, %v7029_v14 }
 0x192   :  { %vm569_vm8 = vmor %vm505_vm13, %vm561_vm9  ;;  %v7677_v0 = vsel %vm8651_vm0, -1000.0, %v7029_v14 }
 0x193   :  { %vm657_vm14 = vmor %vm609_vm10, %vm649_vm7  ;;  %vm8646_vm10 = vcmask 64512  }
 0x194   :  { %vm7638_vm3 = vmor %vm657_vm14, %vm569_vm8 }
 0x195   :  { %vm8649_vm12 = vmmov %vm8646_vm10  ;;  %v7721_v31 = vsel %vm7638_vm3, -1000.0, %v7029_v14 }
 0x196   :  { %vm8650_vm1 = vmmov %vm8646_vm10 }
 0x197   :  { %vm8652_vm9 = vmmov %vm8650_vm1 }
 0x198   :  { %vm8653_vm7 = vmmov %vm8650_vm1 }
 0x199   :  { %vm8654_vm13 = vmmov %vm8650_vm1 }
 0x19a   :  { %vm8655_vm11 = vmmov %vm8650_vm1 }
 0x19b   :  { %vm8656_vm2 = vmmov %vm8650_vm1 }
 0x19c   :  { %vm8657_vm8 = vmmov %vm8650_vm1 }
 0x19d   :  { %vm8658_vm14 = vmmov %vm8650_vm1 }
 0x19e   :  { %vm8659_vm3 = vmmov %vm8650_vm1 }
 0x19f   :  { %vm8660_vm6 = vmmov %vm8650_vm1 }
 0x1a0   :  { %vm8661_vm5 = vmmov %vm8650_vm1 }
 0x1a1   :  { %vm8663_vm4 = vmmov %vm8650_vm1 }
 0x1a2   :  { %vm8664_vm15 = vmmov %vm8650_vm1 }
 0x1a3   :  { %vm8667_vm0 = vmmov %vm8656_vm2 }
 0x22c   :  { %v749_v51 = vpop.f32.mrb[8].mxu0 }
 0x22d   :  { %v7648_v53 = vadd.f32 %v749_v51, %v7645_v50  ;;  %v6529_v55 = vpop.f32.mrb[9].mxu0 }
 0x22f   :  { %v1292_v57 = vsel %vm8646_vm10, %v7648_v53, -inf  ;;  %vm8662_vm10 = vmmov %vm8650_vm1 }
 0x230   :  { %v826_v39 = vpop.f32.mrb[10].mxu0  ;;  %v903_v59 = vpop.f32.mrb[0].mxu1  ;;  %1293 = vmax.xlane.f32.xlu0 %v1292_v57 }
 0x231   :  { %v827_v60 = vadd.f32 %v826_v39, %v7660_v58  ;;  %v7664_v54 = vadd.f32 %v903_v59, %v7653_v56  ;;  %v6534_v61 = vpop.f32.mrb[11].mxu0  ;;  %v6539_v62 = vpop.f32.mrb[1].mxu1 }
 0x233   :  { %v1295_v52 = vsel %vm8649_vm12, %v827_v60, -inf  ;;  %v1298_v41 = vsel %vm8650_vm1, %v7664_v54, -inf  ;;  %vm8665_vm12 = vmmov %vm8650_vm1  ;;  %vm8666_vm1 = vmmov 0  }
 0x234   :  { %1296 = vmax.xlane.f32.xlu1 %v1295_v52  ;;  %v980_v63 = vpop.f32.mrb[2].mxu1  ;;  %v1134_v2 = vpop.f32.mrb[12].mxu0  ;;  %1299 = vmax.xlane.f32.xlu0 %v1298_v41 }
 0x235   :  { %v981_v3 = vadd.f32 %v980_v63, %v7669_v1  ;;  %v6544_v4 = vpop.f32.mrb[3].mxu1  ;;  %v6554_v5 = vpop.f32.mrb[13].mxu0  ;;  %v1135_v6 = vadd.f32 %v1134_v2, %v7677_v0 }
 0x237   :  { %v1301_v7 = vsel %vm8652_vm9, %v981_v3, -inf  ;;  %v1307_v13 = vsel %vm8653_vm7, %v1135_v6, -inf  ;;  %vm8668_vm9 = vmmov %vm8667_vm0 }
 0x238   :  { %v1057_v8 = vpop.f32.mrb[4].mxu1  ;;  %1302 = vmax.xlane.f32.xlu0 %v1301_v7  ;;  %vm8669_vm7 = vmmov %vm8667_vm0 }
 0x239   :  { %v6549_v10 = vpop.f32.mrb[5].mxu1  ;;  %v1288_v11 = vpop.f32.mrb[14].mxu0  ;;  %v7702_v29 = vadd.f32 %v1057_v8, %v7697_v24 }
 0x23a   :  { %v6564_v45 = vpop.f32.mrb[15].mxu0  ;;  %v1289_v12 = vadd.f32 %v1288_v11, %v7685_v9 }
 0x23b   :  { %v1304_v30 = vsel %vm8655_vm11, %v7702_v29, -inf  ;;  %vm8671_vm11 = vmmov %vm8667_vm0 }
 0x23c   :  { %1308 = vmax.xlane.f32.xlu0 %v1307_v13  ;;  %v1211_v15 = vpop.f32.mrb[6].mxu1  ;;  %v1313_v22 = vsel %vm8654_vm13, %v1289_v12, -inf  ;;  %vm8670_vm13 = vmmov %vm8667_vm0 }
 0x23d   :  { %v6559_v18 = vpop.f32.mrb[7].mxu1  ;;  %v7724_v16 = vadd.f32 %v1211_v15, %v7721_v31 }
 0x23f   :  { %v1310_v32 = vsel %vm8656_vm2, %v7724_v16, -inf  ;;  %vm8672_vm2 = vmmov %vm8667_vm0 }
 0x240   :  { %1314 = vmax.xlane.f32.xlu0 %v1313_v22 }
 0x245   :  { %1380 = vrot.lane.b32.xlu1 %v7142_v19, %s7034_s1 }
 0x256   :  { %1456 = vrot.lane.b32.xlu0 %v7140_v17, %s7034_s1 }
 0x25a   :  { %1684 = vrot.lane.b32.xlu0 %v7154_v27, %s7034_s1 }
 0x25e   :  { %1836 = vrot.lane.b32.xlu0 %v7163_v36, %s7034_s1 }
 0x262   :  { %1998 = vrot.lane.b32.xlu0 %v7142_v19, %s7035_s2 }
 0x266   :  { %1996 = vrot.lane.b32.xlu0 %v7142_v19, %s7036_s29 }
 0x269   :  { %1305 = vmax.xlane.f32.xlu1 %v1304_v30 }
 0x26a   :  { %2154 = vrot.lane.b32.xlu0 %v7148_v23, %s7035_s2 }
 0x27a   :  { %1532 = vrot.lane.b32.xlu1 %v7148_v23, %s7034_s1 }
 0x27e   :  { %1608 = vrot.lane.b32.xlu1 %v7146_v21, %s7034_s1 }
 0x282   :  { %1760 = vrot.lane.b32.xlu1 %v7152_v25, %s7034_s1 }
 0x286   :  { %1912 = vrot.lane.b32.xlu1 %v7158_v33, %s7034_s1 }
 0x28a   :  { %2076 = vrot.lane.b32.xlu1 %v7140_v17, %s7035_s2 }
 0x28e   :  { %2074 = vrot.lane.b32.xlu1 %v7140_v17, %s7036_s29 }
 0x2b2   :  { %1311 = vmax.xlane.f32.xlu1 %v1310_v32 }
 0x2bd   :  { %v1294_v26 = vpop.xlane.xlu0 %1293 }
 0x2be   :  { %v1316_v55 = vsub.f32 %v7648_v53, %v1294_v26 }
 0x2c1   :  { %v1297_v28 = vpop.xlane.xlu1 %1296  ;;  %v1300_v34 = vpop.xlane.xlu0 %1299 }
 0x2c2   :  { %v1317_v35 = vsub.f32 %v827_v60, %v1297_v28  ;;  %v1324_v60 = vmul.f32 1.442695, %v1316_v55  ;;  %v1318_v61 = vsub.f32 %v7664_v54, %v1300_v34 }
 0x2c3   :  { %2232 = vrot.lane.b32.xlu1 %v7146_v21, %s7035_s2 }
 0x2c4   :  { %v1326_v38 = vmul.f32 1.442695, %v1317_v35  ;;  %v1328_v53 = vmul.f32 1.442695, %v1318_v61 }
 0x2c5   :  { %v1381_v40 = vpop.permute.xlu1 %1380  ;;  %v1303_v42 = vpop.xlane.xlu0 %1302 }
 0x2c6   :  { %6901 = vpow2.f32 %v1326_v38  ;;  %v1319_v43 = vsub.f32 %v981_v3, %v1303_v42  ;;  %6566 = vmatpush3.msra.mxu1 %v1381_v40 }
 0x2c7   :  { %6575 = vmatprep.subr.mxu1 %v7029_v14 }
 0x2c8   :  { %v1330_v44 = vmul.f32 1.442695, %v1319_v43 }
 0x2c9   :  { %v1309_v46 = vpop.xlane.xlu0 %1308 }
 0x2ca   :  { %6903 = vpow2.f32 %v1330_v44  ;;  %v1321_v47 = vsub.f32 %v1135_v6, %v1309_v46 }
 0x2cc   :  { %v1334_v48 = vmul.f32 1.442695, %v1321_v47 }
 0x2cd   :  { %v1315_v49 = vpop.xlane.xlu0 %1314 }
 0x2ce   :  { %6905 = vpow2.f32 %v1334_v48  ;;  %v1323_v20 = vsub.f32 %v1289_v12, %v1315_v49 }
 0x2d0   :  { %v7731_v37 = vpop.eup %6901  ;;  %v1338_v51 = vmul.f32 1.442695, %v1323_v20 }
 0x2d1   :  { %v1457_v57 = vpop.permute.xlu0 %1456  ;;  %v1343_v39 = vsel %vm8657_vm8, %v7731_v37, 0.0  ;;  %vm8673_vm8 = vmmov %vm8667_vm0 }
 0x2d2   :  { %6907 = vpow2.f32 %v1338_v51  ;;  %1344 = vadd.xlane.f32.xlu0 %v1343_v39  ;;  %6571 = vmatpush3.msra.mxu0 %v1457_v57 }
 0x2d3   :  { %6580 = vmatprep.subr.mxu0 %v7029_v14  ;;  %6909 = vpow2.f32 %v1324_v60 }
 0x2d4   :  { %v7737_v59 = vpop.eup %6903  ;;  %6911 = vpow2.f32 %v1328_v53 }
 0x2d5   :  { %v1349_v62 = vsel %vm8658_vm14, %v7737_v59, 0.0  ;;  %v7778_v26 = vpop.permute.xlu0 %1684  ;;  %vm8674_vm14 = vmmov %vm8667_vm0 }
 0x2d6   :  { %1350 = vadd.xlane.f32.xlu0 %v1349_v62 }
 0x2d8   :  { %v7742_v52 = vpop.eup %6905 }
 0x2d9   :  { %v1355_v41 = vsel %vm8659_vm3, %v7742_v52, 0.0  ;;  %v7780_v28 = vpop.permute.xlu0 %1836  ;;  %vm8675_vm3 = vmmov %vm8667_vm0 }
 0x2da   :  { %1356 = vadd.xlane.f32.xlu0 %v1355_v41 }
 0x2dc   :  { %v7746_v63 = vpop.eup %6907 }
 0x2dd   :  { %v1361_v2 = vsel %vm8660_vm6, %v7746_v63, 0.0  ;;  %v7750_v54 = vpop.eup %6909  ;;  %v7784_v35 = vpop.permute.xlu0 %1998  ;;  %vm8676_vm6 = vmmov %vm8667_vm0 }
 0x2de   :  { %1362 = vadd.xlane.f32.xlu0 %v1361_v2  ;;  %v1340_v3 = vsel %vm8661_vm5, %v7750_v54, 0.0  ;;  %v7754_v4 = vpop.eup %6911  ;;  %vm8677_vm5 = vmmov %vm8667_vm0 }
 0x2df   :  { %v1346_v5 = vsel %vm8662_vm10, %v7754_v4, 0.0  ;;  %vm8678_vm10 = vmmov %vm8667_vm0 }
 0x2e1   :  { %v7788_v40 = vpop.permute.xlu0 %1996 }
 0x2e5   :  { %v7790_v42 = vpop.permute.xlu0 %2154 }
 0x2e7   :  { %1341 = vadd.xlane.f32.xlu1 %v1340_v3 }
 0x2eb   :  { %1347 = vadd.xlane.f32.xlu1 %v1346_v5 }
 0x2f4   :  { %2152 = vrot.lane.b32.xlu0 %v7148_v23, %s7036_s29 }
 0x2f6   :  { %v1306_v6 = vpop.xlane.xlu1 %1305 }
 0x2f7   :  { %v1320_v7 = vsub.f32 %v7702_v29, %v1306_v6 }
 0x2f8   :  { %2310 = vrot.lane.b32.xlu0 %v7154_v27, %s7035_s2 }
 0x2f9   :  { %v1332_v8 = vmul.f32 1.442695, %v1320_v7 }
 0x2fa   :  { %v7775_v45 = vpop.permute.xlu1 %1532 }
 0x2fb   :  { %6913 = vpow2.f32 %v1332_v8 }
 0x2fc   :  { %2308 = vrot.lane.b32.xlu0 %v7154_v27, %s7036_s29 }
 0x2fe   :  { %v1609_v12 = vpop.permute.xlu1 %1608 }
 0x300   :  { %2466 = vrot.lane.b32.xlu0 %v7163_v36, %s7035_s2 }
 0x302   :  { %v1761_v13 = vpop.permute.xlu1 %1760 }
 0x304   :  { %2464 = vrot.lane.b32.xlu0 %v7163_v36, %s7036_s29 }
 0x305   :  { %v7769_v10 = vpop.eup %6913 }
 0x306   :  { %v1352_v11 = vsel %vm8663_vm4, %v7769_v10, 0.0  ;;  %v1913_v15 = vpop.permute.xlu1 %1912  ;;  %vm8679_vm4 = vmmov %vm8667_vm0 }
 0x307   :  { %1353 = vadd.xlane.f32.xlu1 %v1352_v11 }
 0x30a   :  { %v2077_v18 = vpop.permute.xlu1 %2076 }
 0x30e   :  { %v2075_v22 = vpop.permute.xlu1 %2074 }
 0x318   :  { %2230 = vrot.lane.b32.xlu1 %v7146_v21, %s7036_s29 }
 0x33f   :  { %v1312_v29 = vpop.xlane.xlu1 %1311 }
 0x340   :  { %v1322_v30 = vsub.f32 %v7724_v16, %v1312_v29 }
 0x342   :  { %v1336_v32 = vmul.f32 1.442695, %v1322_v30 }
 0x343   :  { %v2233_v51 = vpop.permute.xlu1 %2232 }
 0x344   :  { %6915 = vpow2.f32 %v1336_v32 }
 0x34e   :  { %v7782_v34 = vpop.eup %6915 }
 0x34f   :  { %v1358_v38 = vsel %vm8664_vm15, %v7782_v34, 0.0  ;;  %vm8680_vm15 = vmmov %vm8667_vm0 }
 0x350   :  { %1359 = vadd.xlane.f32.xlu1 %v1358_v38 }
 0x35f   :  { %v1345_v43 = vpop.xlane.xlu0 %1344 }
 0x360   :  { %6917 = vrcp.f32 %v1345_v43 }
 0x361   :  { %2388 = vrot.lane.b32.xlu1 %v7152_v25, %s7035_s2 }
 0x363   :  { %v1351_v16 = vpop.xlane.xlu0 %1350 }
 0x364   :  { %6919 = vrcp.f32 %v1351_v16 }
 0x365   :  { %2386 = vrot.lane.b32.xlu1 %v7152_v25, %s7036_s29 }
 0x367   :  { %v1357_v44 = vpop.xlane.xlu0 %1356 }
 0x368   :  { %6921 = vrcp.f32 %v1357_v44 }
 0x369   :  { %2544 = vrot.lane.b32.xlu1 %v7158_v33, %s7035_s2 }
 0x36a   :  { %v6918_v46 = vpop.eup %6917 }
 0x36b   :  { %v1363_v47 = vpop.xlane.xlu0 %1362  ;;  %v1367_v48 = vmul.f32 %v6918_v46, %v7731_v37 }
 0x36c   :  { %6923 = vrcp.f32 %v1363_v47 }
 0x36d   :  { %2542 = vrot.lane.b32.xlu1 %v7158_v33, %s7036_s29  ;;  %6573 = vmatmul.mubr.msk.f32.vlgmr.msra.gmra.mrb[16].mxu0 %vm8665_vm12, %v1367_v48  ;;  %vm8681_vm12 = vmmov %vm8667_vm0 }
 0x36e   :  { %v6920_v49 = vpop.eup %6919  ;;  %6581 = vmatpush3.msra.mxu0 %v1609_v12  ;;  %6582 = vmatprep.mubr.msk.f32.mxu0 %vm8666_vm1, %v7029_v14 }
 0x36f   :  { %6590 = vmatprep.subr.mxu0 %v7029_v14  ;;  %v1371_v20 = vmul.f32 %v6920_v49, %v7737_v59  ;;  %v2153_v5 = vpop.permute.xlu0 %2152 }
 0x371   :  { %6583 = vmatmul.mubr.msk.f32.vlgmr.msra.gmra.mrb[18].mxu0 %vm8667_vm0, %v1371_v20 }
 0x372   :  { %v6922_v55 = vpop.eup %6921  ;;  %6591 = vmatpush3.msra.mxu0 %v1761_v13  ;;  %6592 = vmatprep.mubr.msk.f32.mxu0 %vm8666_vm1, %v7029_v14 }
 0x373   :  { %6600 = vmatprep.subr.mxu0 %v7029_v14  ;;  %v1375_v37 = vmul.f32 %v6922_v55, %v7742_v52  ;;  %v2311_v8 = vpop.permute.xlu0 %2310 }
 0x374   :  { %v1342_v57 = vpop.xlane.xlu1 %1341 }
 0x375   :  { %6925 = vrcp.f32 %v1342_v57  ;;  %6593 = vmatmul.mubr.msk.f32.vlgmr.msra.gmra.mrb[20].mxu0 %vm8668_vm9, %v1375_v37  ;;  %vm8682_vm9 = vmmov %vm8667_vm0 }
 0x376   :  { %v6924_v39 = vpop.eup %6923  ;;  %6601 = vmatpush3.msra.mxu0 %v1913_v15  ;;  %6602 = vmatprep.mubr.msk.f32.mxu0 %vm8666_vm1, %v7029_v14 }
 0x377   :  { %v1379_v59 = vmul.f32 %v6924_v39, %v7746_v63  ;;  %6610 = vmatprep.subr.mxu0 %v7029_v14  ;;  %v2309_v12 = vpop.permute.xlu0 %2308 }
 0x378   :  { %v1348_v60 = vpop.xlane.xlu1 %1347 }
 0x379   :  { %6927 = vrcp.f32 %v1348_v60  ;;  %6603 = vmatmul.mubr.msk.f32.vlgmr.msra.gmra.mrb[22].mxu0 %vm8669_vm7, %v1379_v59  ;;  %vm8683_vm7 = vmmov %vm8667_vm0 }
 0x37a   :  { %6612 = vmatprep.mubr.msk.f32.mxu0 %vm8666_vm1, %v7029_v14 }
 0x37b   :  { %v2467_v13 = vpop.permute.xlu0 %2466 }
 0x37d   :  { %6611 = vmatpush3.xpose.msk.msra.mxu0 %vm8670_vm13, %v2077_v18  ;;  %vm8684_vm13 = vmmov %vm8667_vm0 }
 0x37e   :  { %6620 = vmatprep.subr.mxu0 %v7029_v14 }
 0x37f   :  { %v6926_v61 = vpop.eup %6925  ;;  %v2465_v15 = vpop.permute.xlu0 %2464 }
 0x380   :  { %6613 = vmatmul.mubr.msk.f32.vlgmr.msra.gmra.mrb[24].mxu0 %vm8671_vm11, %v2075_v22  ;;  %v1365_v62 = vmul.f32 %v6926_v61, %v7750_v54  ;;  %vm8685_vm11 = vmmov %vm8667_vm0 }
 0x381   :  { %6621 = vmatpush3.xpose.msk.msra.mxu0 %vm8672_vm2, %v2233_v51  ;;  %6622 = vmatprep.mubr.msk.f32.mxu0 %vm8666_vm1, %v7029_v14  ;;  %vm8686_vm2 = vmmov %vm8667_vm0 }
 0x382   :  { %6568 = vmatmul.mubr.msk.f32.vlgmr.msra.gmra.mrb[8].mxu1 %vm8673_vm8, %v1365_v62  ;;  %6630 = vmatprep.subr.mxu0 %v7029_v14  ;;  %vm8687_vm8 = vmmov %vm8667_vm0 }
 0x383   :  { %v6928_v52 = vpop.eup %6927  ;;  %6576 = vmatpush3.msra.mxu1 %v7775_v45  ;;  %6577 = vmatprep.mubr.msk.f32.mxu1 %vm8666_vm1, %v7029_v14 }
 0x384   :  { %6585 = vmatprep.subr.mxu1 %v7029_v14  ;;  %v1369_v53 = vmul.f32 %v6928_v52, %v7754_v4 }
 0x386   :  { %6578 = vmatmul.mubr.msk.f32.vlgmr.msra.gmra.mrb[10].mxu1 %vm8674_vm14, %v1369_v53  ;;  %vm8688_vm14 = vmmov %vm8667_vm0 }
 0x387   :  { %6586 = vmatpush3.msra.mxu1 %v7778_v26  ;;  %6587 = vmatprep.mubr.msk.f32.mxu1 %vm8666_vm1, %v7029_v14 }
 0x388   :  { %6595 = vmatprep.subr.mxu1 %v7029_v14 }
 0x394   :  { %v1354_v41 = vpop.xlane.xlu1 %1353 }
 0x395   :  { %6929 = vrcp.f32 %v1354_v41 }
 0x398   :  { %v2231_v63 = vpop.permute.xlu1 %2230 }
 0x399   :  { %6623 = vmatmul.mubr.msk.f32.vlgmr.msra.gmra.mrb[26].mxu0 %vm8675_vm3, %v2231_v63  ;;  %vm8689_vm3 = vmmov %vm8667_vm0 }
 0x39a   :  { %6632 = vmatprep.mubr.msk.f32.mxu0 %vm8666_vm1, %v7029_v14 }
 0x39f   :  { %v6930_v2 = vpop.eup %6929 }
 0x3a0   :  { %v1373_v54 = vmul.f32 %v6930_v2, %v7769_v10 }
 0x3a2   :  { %6588 = vmatmul.mubr.msk.f32.vlgmr.msra.gmra.mrb[12].mxu1 %vm8676_vm6, %v1373_v54  ;;  %vm8690_vm6 = vmmov %vm8667_vm0 }
 0x3a3   :  { %6596 = vmatpush3.msra.mxu1 %v7780_v28  ;;  %6597 = vmatprep.mubr.msk.f32.mxu1 %vm8666_vm1, %v7029_v14 }
 0x3a4   :  { %6605 = vmatprep.subr.mxu1 %v7029_v14 }
 0x3dd   :  { %v1360_v3 = vpop.xlane.xlu1 %1359 }
 0x3de   :  { %6931 = vrcp.f32 %v1360_v3 }
 0x3e1   :  { %v2389_v4 = vpop.permute.xlu1 %2388 }
 0x3e2   :  { %6631 = vmatpush3.xpose.msk.msra.mxu0 %vm8677_vm5, %v2389_v4  ;;  %vm8691_vm5 = vmmov %vm8667_vm0 }
 0x3e3   :  { %6640 = vmatprep.subr.mxu0 %v7029_v14 }
 0x3e5   :  { %v2387_v6 = vpop.permute.xlu1 %2386 }
 0x3e6   :  { %6633 = vmatmul.mubr.msk.f32.vlgmr.msra.gmra.mrb[28].mxu0 %vm8678_vm10, %v2387_v6  ;;  %vm8692_vm10 = vmmov %vm8667_vm0 }
 0x3e7   :  { %6642 = vmatprep.mubr.msk.f32.mxu0 %vm8666_vm1, %v7029_v14 }
 0x3e8   :  { %v6932_v7 = vpop.eup %6931 }
 0x3e9   :  { %v2545_v10 = vpop.permute.xlu1 %2544  ;;  %v1377_v11 = vmul.f32 %v6932_v7, %v7782_v34 }
 0x3ea   :  { %6641 = vmatpush3.xpose.msk.msra.mxu0 %vm8679_vm4, %v2545_v10  ;;  %vm8693_vm4 = vmmov %vm8667_vm0 }
 0x3eb   :  { %6598 = vmatmul.mubr.msk.f32.vlgmr.msra.gmra.mrb[14].mxu1 %vm8680_vm15, %v1377_v11  ;;  %6650 = vmatprep.subr.mxu0 %v7029_v14  ;;  %vm8694_vm15 = vmmov %vm8667_vm0 }
 0x3ec   :  { %6606 = vmatpush3.xpose.msk.msra.mxu1 %vm8681_vm12, %v7784_v35  ;;  %6607 = vmatprep.mubr.msk.f32.mxu1 %vm8666_vm1, %v7029_v14  ;;  %vm8695_vm12 = vmmov %vm8667_vm0 }
 0x3ed   :  { %v2543_v45 = vpop.permute.xlu1 %2542  ;;  %6615 = vmatprep.subr.mxu1 %v7029_v14 }
 0x3ee   :  { %6643 = vmatmul.mubr.msk.f32.vlgmr.msra.gmra.mrb[30].mxu0 %vm8667_vm0, %v2543_v45 }
 0x3ef   :  { %6608 = vmatmul.mubr.msk.f32.vlgmr.msra.gmra.mrb[16].mxu1 %vm8682_vm9, %v7788_v40  ;;  %6652 = vmatprep.mubr.msk.f32.mxu0 %vm8666_vm1, %v7029_v14  ;;  %vm8696_vm9 = vmmov %vm8667_vm0 }
 0x3f0   :  { %6616 = vmatpush3.xpose.msk.msra.mxu1 %vm8683_vm7, %v7790_v42  ;;  %6617 = vmatprep.mubr.msk.f32.mxu1 %vm8666_vm1, %v7029_v14  ;;  %vm8697_vm7 = vmmov %vm8667_vm0 }
 0x3f1   :  { %6625 = vmatprep.subr.mxu1 %v7029_v14 }
 0x3f3   :  { %6618 = vmatmul.mubr.msk.f32.vlgmr.msra.gmra.mrb[18].mxu1 %vm8684_vm13, %v2153_v5  ;;  %vm8698_vm13 = vmmov %vm8667_vm0 }
 0x3f4   :  { %6626 = vmatpush3.xpose.msk.msra.mxu1 %vm8685_vm11, %v2311_v8  ;;  %6627 = vmatprep.mubr.msk.f32.mxu1 %vm8666_vm1, %v7029_v14  ;;  %vm8699_vm11 = vmmov %vm8667_vm0 }
 0x3f5   :  { %6635 = vmatprep.subr.mxu1 %v7029_v14 }
 0x3f7   :  { %6628 = vmatmul.mubr.msk.f32.vlgmr.msra.gmra.mrb[20].mxu1 %vm8686_vm2, %v2309_v12  ;;  %vm8700_vm2 = vmmov %vm8667_vm0 }
 0x3f8   :  { %6636 = vmatpush3.xpose.msk.msra.mxu1 %vm8687_vm8, %v2467_v13  ;;  %6637 = vmatprep.mubr.msk.f32.mxu1 %vm8666_vm1, %v7029_v14  ;;  %vm8701_vm8 = vmmov %vm8667_vm0 }
 0x3f9   :  { %6645 = vmatprep.subr.mxu1 %v7029_v14 }
 0x3fb   :  { %6638 = vmatmul.mubr.msk.f32.vlgmr.msra.gmra.mrb[22].mxu1 %vm8688_vm14, %v2465_v15  ;;  %vm8702_vm14 = vmmov %vm8667_vm0 }
 0x3fc   :  { %6647 = vmatprep.mubr.msk.f32.mxu1 %vm8666_vm1, %v7029_v14 }
 0x440   :  { %v1528_v18 = vpop.f32.mrb[16].mxu0 }
 0x441   :  { %1989 = vst.msk [vmem:[#allocation2 + $0x8] sm:$0xff] %vm8689_vm3, %v1528_v18  ;;  %v6574_v22 = vpop.f32.mrb[17].mxu0  ;;  %vm8703_vm3 = vmmov %vm8667_vm0 }
 0x444   :  { %v1680_v29 = vpop.f32.mrb[18].mxu0 }
 0x445   :  { %1991 = vst.msk [vmem:[#allocation2 + $0x18] sm:$0xff] %vm8690_vm6, %v1680_v29  ;;  %v6584_v30 = vpop.f32.mrb[19].mxu0  ;;  %vm8704_vm6 = vmmov %vm8667_vm0 }
 0x448   :  { %v1832_v32 = vpop.f32.mrb[20].mxu0 }
 0x449   :  { %1993 = vst.msk [vmem:[#allocation2 + $0x28] sm:$0xff] %vm8691_vm5, %v1832_v32  ;;  %v6594_v26 = vpop.f32.mrb[21].mxu0  ;;  %vm8705_vm5 = vmmov %vm8667_vm0 }
 0x44c   :  { %v1984_v28 = vpop.f32.mrb[22].mxu0 }
 0x44d   :  { %1995 = vst.msk [vmem:[#allocation2 + $0x38] sm:$0xff] %vm8692_vm10, %v1984_v28  ;;  %v6604_v34 = vpop.f32.mrb[23].mxu0  ;;  %vm8706_vm10 = vmmov %vm8667_vm0 }
 0x453   :  { %v2148_v35 = vpop.f32.mrb[24].mxu0 }
 0x454   :  { %v7889_v38 = vadd.f32 %v2148_v35, %v7660_v58  ;;  %v6614_v40 = vpop.f32.mrb[25].mxu0 }
 0x455   :  { %v1452_v42 = vpop.f32.mrb[8].mxu1 }
 0x456   :  { %1988 = vst.msk [vmem:[#allocation2] sm:$0xff] %vm8693_vm4, %v1452_v42  ;;  %v6569_v43 = vpop.f32.mrb[9].mxu1  ;;  %v2623_v16 = vsel %vm8694_vm15, %v7889_v38, -inf  ;;  %vm8707_vm4 = vmmov %vm8667_vm0 }
 0x457   :  { %2624 = vmax.xlane.f32.xlu1 %v2623_v16  ;;  %vm8708_vm15 = vmmov %vm8667_vm0 }
 0x459   :  { %v1604_v44 = vpop.f32.mrb[10].mxu1 }
 0x45a   :  { %1990 = vst.msk [vmem:[#allocation2 + $0x10] sm:$0xff] %vm8695_vm12, %v1604_v44  ;;  %v6579_v46 = vpop.f32.mrb[11].mxu1  ;;  %vm8709_vm12 = vmmov %vm8667_vm0 }
 0x46c   :  { %v2304_v47 = vpop.f32.mrb[26].mxu0 }
 0x46d   :  { %v6624_v48 = vpop.f32.mrb[27].mxu0  ;;  %v2305_v2 = vadd.f32 %v2304_v47, %v7669_v1 }
 0x46f   :  { %v2629_v7 = vsel %vm8699_vm11, %v2305_v2, -inf  ;;  %vm8713_vm11 = vmmov %vm8667_vm0 }
 0x475   :  { %v1756_v49 = vpop.f32.mrb[12].mxu1 }
 0x476   :  { %1992 = vst.msk [vmem:[#allocation2 + $0x20] sm:$0xff] %vm8667_vm0, %v1756_v49  ;;  %v6589_v20 = vpop.f32.mrb[13].mxu1 }
 0x4b9   :  { %v2460_v51 = vpop.f32.mrb[28].mxu0 }
 0x4ba   :  { %v6634_v55 = vpop.f32.mrb[29].mxu0  ;;  %v2461_v6 = vadd.f32 %v2460_v51, %v7677_v0 }
 0x4bc   :  { %v2635_v12 = vsel %vm8701_vm8, %v2461_v6, -inf  ;;  %vm8715_vm8 = vmmov %vm8667_vm0 }
 0x4be   :  { %v1908_v37 = vpop.f32.mrb[14].mxu1 }
 0x4bf   :  { %1994 = vst.msk [vmem:[#allocation2 + $0x30] sm:$0xff] %vm8696_vm9, %v1908_v37  ;;  %v6599_v57 = vpop.f32.mrb[15].mxu1  ;;  %vm8710_vm9 = vmmov %vm8667_vm0 }
 0x4c1   :  { %v2616_v39 = vpop.f32.mrb[30].mxu0 }
 0x4c2   :  { %v2070_v59 = vpop.f32.mrb[16].mxu1  ;;  %v6644_v60 = vpop.f32.mrb[31].mxu0  ;;  %v2617_v45 = vadd.f32 %v2616_v39, %v7685_v9 }
 0x4c3   :  { %v2071_v61 = vadd.f32 %v2070_v59, %v7645_v50  ;;  %v6609_v62 = vpop.f32.mrb[17].mxu1 }
 0x4c4   :  { %v2641_v13 = vsel %vm8702_vm14, %v2617_v45, -inf  ;;  %vm8716_vm14 = vmmov %vm8667_vm0 }
 0x4c5   :  { %v2620_v52 = vsel %vm8697_vm7, %v2071_v61, -inf  ;;  %vm8711_vm7 = vmmov %vm8667_vm0 }
 0x4c6   :  { %2621 = vmax.xlane.f32.xlu0 %v2620_v52  ;;  %v2226_v53 = vpop.f32.mrb[18].mxu1 }
 0x4c7   :  { %v2227_v41 = vadd.f32 %v2226_v53, %v7653_v56  ;;  %v6619_v63 = vpop.f32.mrb[19].mxu1 }
 0x4c9   :  { %v2626_v54 = vsel %vm8698_vm13, %v2227_v41, -inf  ;;  %vm8712_vm13 = vmmov %vm8667_vm0 }
 0x4ca   :  { %2627 = vmax.xlane.f32.xlu0 %v2626_v54  ;;  %v2382_v3 = vpop.f32.mrb[20].mxu1 }
 0x4cb   :  { %v2383_v4 = vadd.f32 %v2382_v3, %v7697_v24  ;;  %v6629_v5 = vpop.f32.mrb[21].mxu1 }
 0x4cd   :  { %v2632_v8 = vsel %vm8700_vm2, %v2383_v4, -inf  ;;  %vm8714_vm2 = vmmov %vm8667_vm0 }
 0x4ce   :  { %2630 = vmax.xlane.f32.xlu0 %v2629_v7  ;;  %2633 = vmax.xlane.f32.xlu1 %v2632_v8  ;;  %v2538_v10 = vpop.f32.mrb[22].mxu1 }
 0x4cf   :  { %v6639_v11 = vpop.f32.mrb[23].mxu1  ;;  %v7918_v15 = vadd.f32 %v2538_v10, %v7721_v31 }
 0x4d1   :  { %v2638_v18 = vsel %vm8703_vm3, %v7918_v15, -inf  ;;  %vm8717_vm3 = vmmov %vm8667_vm0 }
 0x4d2   :  { %2636 = vmax.xlane.f32.xlu0 %v2635_v12 }
 0x4d6   :  { %2642 = vmax.xlane.f32.xlu0 %v2641_v13 }
 0x4df   :  { %2708 = vrot.lane.b32.xlu1 %v7142_v19, %s7037_s30 }
 0x4e4   :  { %v2625_v22 = vpop.xlane.xlu1 %2624 }
 0x4e5   :  { %v2645_v29 = vsub.f32 %v7889_v38, %v2625_v22 }
 0x4e7   :  { %v2654_v30 = vmul.f32 1.442695, %v2645_v29 }
 0x4e9   :  { %6933 = vpow2.f32 %v2654_v30 }
 0x4ec   :  { %2784 = vrot.lane.b32.xlu0 %v7140_v17, %s7037_s30 }
 0x4f0   :  { %3012 = vrot.lane.b32.xlu0 %v7154_v27, %s7037_s30 }
 0x4f3   :  { %v7927_v32 = vpop.eup %6933 }
 0x4f4   :  { %3164 = vrot.lane.b32.xlu0 %v7163_v36, %s7037_s30  ;;  %v2671_v26 = vsel %vm8704_vm6, %v7927_v32, 0.0  ;;  %vm8718_vm6 = vmmov %vm8667_vm0 }
 0x4f8   :  { %3359 = vrot.lane.b32.xlu0 %v7142_v19, %s7038_s8 }
 0x4fc   :  { %3357 = vrot.lane.b32.xlu0 %v7142_v19, %s7039_s9 }
 0x500   :  { %3515 = vrot.lane.b32.xlu0 %v7148_v23, %s7038_s8 }
 0x503   :  { %2639 = vmax.xlane.f32.xlu1 %v2638_v18 }
 0x514   :  { %2860 = vrot.lane.b32.xlu1 %v7148_v23, %s7037_s30 }
 0x518   :  { %2936 = vrot.lane.b32.xlu1 %v7146_v21, %s7037_s30 }
 0x51c   :  { %3088 = vrot.lane.b32.xlu1 %v7152_v25, %s7037_s30 }
 0x51f   :  { %2672 = vadd.xlane.f32.xlu0 %v2671_v26 }
 0x520   :  { %3240 = vrot.lane.b32.xlu1 %v7158_v33, %s7037_s30 }
 0x524   :  { %3437 = vrot.lane.b32.xlu1 %v7140_v17, %s7038_s8 }
 0x528   :  { %3435 = vrot.lane.b32.xlu1 %v7140_v17, %s7039_s9 }
 0x52c   :  { %3593 = vrot.lane.b32.xlu1 %v7146_v21, %s7038_s8 }
 0x553   :  { %v2622_v28 = vpop.xlane.xlu0 %2621 }
 0x554   :  { %v2644_v34 = vsub.f32 %v2071_v61, %v2622_v28 }
 0x556   :  { %v2652_v35 = vmul.f32 1.442695, %v2644_v34 }
 0x557   :  { %v2628_v38 = vpop.xlane.xlu0 %2627 }
 0x558   :  { %6935 = vpow2.f32 %v2652_v35  ;;  %v2646_v40 = vsub.f32 %v2227_v41, %v2628_v38 }
 0x55a   :  { %v2656_v42 = vmul.f32 1.442695, %v2646_v40 }
 0x55b   :  { %v2634_v43 = vpop.xlane.xlu1 %2633  ;;  %v2631_v16 = vpop.xlane.xlu0 %2630 }
 0x55c   :  { %6937 = vpow2.f32 %v2656_v42  ;;  %v2648_v44 = vsub.f32 %v2383_v4, %v2634_v43  ;;  %v2647_v46 = vsub.f32 %v2305_v2, %v2631_v16 }
 0x55e   :  { %v2660_v47 = vmul.f32 1.442695, %v2648_v44  ;;  %v2658_v48 = vmul.f32 1.442695, %v2647_v46 }
 0x55f   :  { %v2709_v49 = vpop.permute.xlu1 %2708  ;;  %v2637_v20 = vpop.xlane.xlu0 %2636 }
 0x560   :  { %6939 = vpow2.f32 %v2660_v47  ;;  %v2649_v51 = vsub.f32 %v2461_v6, %v2637_v20  ;;  %6646 = vmatpush3.msra.mxu1 %v2709_v49 }
 0x561   :  { %6941 = vpow2.f32 %v2658_v48  ;;  %6655 = vmatprep.subr.mxu1 %v7029_v14 }
 0x562   :  { %v7940_v55 = vpop.eup %6935  ;;  %v2662_v37 = vmul.f32 1.442695, %v2649_v51 }
 0x563   :  { %v2643_v57 = vpop.xlane.xlu0 %2642  ;;  %v2668_v39 = vsel %vm8705_vm5, %v7940_v55, 0.0  ;;  %vm8719_vm5 = vmmov %vm8667_vm0 }
 0x564   :  { %6943 = vpow2.f32 %v2662_v37  ;;  %v2651_v59 = vsub.f32 %v2617_v45, %v2643_v57  ;;  %2669 = vadd.xlane.f32.xlu1 %v2668_v39 }
 0x566   :  { %v7944_v60 = vpop.eup %6937  ;;  %v2666_v61 = vmul.f32 1.442695, %v2651_v59 }
 0x567   :  { %v2785_v62 = vpop.permute.xlu0 %2784  ;;  %v2674_v52 = vsel %vm8706_vm10, %v7944_v60, 0.0  ;;  %vm8720_vm10 = vmmov %vm8667_vm0 }
 0x568   :  { %6945 = vpow2.f32 %v2666_v61  ;;  %2675 = vadd.xlane.f32.xlu1 %v2674_v52  ;;  %6651 = vmatpush3.msra.mxu0 %v2785_v62 }
 0x569   :  { %6660 = vmatprep.subr.mxu0 %v7029_v14 }
 0x56a   :  { %v7949_v53 = vpop.eup %6939 }
 0x56b   :  { %v7951_v41 = vpop.eup %6941  ;;  %v2680_v63 = vsel %vm8707_vm4, %v7949_v53, 0.0  ;;  %v7969_v6 = vpop.permute.xlu0 %3012  ;;  %vm8721_vm4 = vmmov %vm8667_vm0 }
 0x56c   :  { %2681 = vadd.xlane.f32.xlu1 %v2680_v63  ;;  %v2677_v2 = vsel %vm8708_vm15, %v7951_v41, 0.0  ;;  %vm8722_vm15 = vmmov %vm8667_vm0 }
 0x56d   :  { %2678 = vadd.xlane.f32.xlu0 %v2677_v2 }
 0x56e   :  { %v7957_v54 = vpop.eup %6943 }
 0x56f   :  { %v2683_v3 = vsel %vm8709_vm12, %v7957_v54, 0.0  ;;  %v7974_v11 = vpop.permute.xlu0 %3164  ;;  %vm8723_vm12 = vmmov %vm8667_vm0 }
 0x571   :  { %2684 = vadd.xlane.f32.xlu0 %v2683_v3 }
 0x572   :  { %v7961_v4 = vpop.eup %6945 }
 0x573   :  { %v2689_v5 = vsel %vm8667_vm0, %v7961_v4, 0.0  ;;  %v7980_v45 = vpop.permute.xlu0 %3359 }
 0x575   :  { %2690 = vadd.xlane.f32.xlu0 %v2689_v5 }
 0x58b   :  { %3513 = vrot.lane.b32.xlu0 %v7148_v23, %s7039_s9 }
 0x58f   :  { %3671 = vrot.lane.b32.xlu0 %v7154_v27, %s7038_s8 }
 0x590   :  { %v2640_v7 = vpop.xlane.xlu1 %2639 }
 0x591   :  { %v2650_v8 = vsub.f32 %v7918_v15, %v2640_v7  ;;  %v7988_v15 = vpop.permute.xlu0 %3357 }
 0x593   :  { %v2664_v10 = vmul.f32 1.442695, %v2650_v8  ;;  %3669 = vrot.lane.b32.xlu0 %v7154_v27, %s7039_s9 }
 0x594   :  { %v2861_v29 = vpop.permute.xlu1 %2860 }
 0x595   :  { %6947 = vpow2.f32 %v2664_v10  ;;  %v7994_v18 = vpop.permute.xlu0 %3515 }
 0x597   :  { %3827 = vrot.lane.b32.xlu0 %v7163_v36, %s7038_s8 }
 0x598   :  { %v2937_v28 = vpop.permute.xlu1 %2936 }
 0x59b   :  { %3825 = vrot.lane.b32.xlu0 %v7163_v36, %s7039_s9 }
 0x59f   :  { %v7982_v12 = vpop.eup %6947  ;;  %4145 = vrot.lane.b32.xlu0 %v7140_v17, %s7040_s10 }
 0x5a0   :  { %v2686_v13 = vsel %vm8710_vm9, %v7982_v12, 0.0  ;;  %vm8724_vm9 = vmmov %vm8667_vm0 }
 0x5a1   :  { %2687 = vadd.xlane.f32.xlu1 %v2686_v13 }
 0x5a3   :  { %4373 = vrot.lane.b32.xlu0 %v7154_v27, %s7040_s10 }
 0x5a7   :  { %4525 = vrot.lane.b32.xlu0 %v7163_v36, %s7040_s10 }
 0x5ab   :  { %4720 = vrot.lane.b32.xlu0 %v7142_v19, %s7041_s11 }
 0x5ac   :  { %v2673_v22 = vpop.xlane.xlu0 %2672 }
 0x5ad   :  { %6949 = vrcp.f32 %v2673_v22 }
 0x5af   :  { %4718 = vrot.lane.b32.xlu0 %v7142_v19, %s7042_s12 }
 0x5b2   :  { %3591 = vrot.lane.b32.xlu1 %v7146_v21, %s7039_s9 }
 0x5b6   :  { %3749 = vrot.lane.b32.xlu1 %v7152_v25, %s7038_s8 }
 0x5b7   :  { %v6950_v30 = vpop.eup %6949 }
 0x5b8   :  { %v2695_v26 = vmul.f32 %v6950_v30, %v7927_v32  ;;  %v3089_v32 = vpop.permute.xlu1 %3088 }
 0x5ba   :  { %3747 = vrot.lane.b32.xlu1 %v7152_v25, %s7039_s9  ;;  %6653 = vmatmul.mubr.msk.f32.vlgmr.msra.gmra.mrb[32].mxu0 %vm8711_vm7, %v2695_v26  ;;  %vm8725_vm7 = vmmov %vm8667_vm0 }
 0x5bb   :  { %6661 = vmatpush3.msra.mxu0 %v2937_v28  ;;  %6662 = vmatprep.mubr.msk.f32.mxu0 %vm8666_vm1, %v7029_v14 }
 0x5bc   :  { %6670 = vmatprep.subr.mxu0 %v7029_v14  ;;  %v3241_v34 = vpop.permute.xlu1 %3240 }
 0x5be   :  { %3905 = vrot.lane.b32.xlu1 %v7158_v33, %s7038_s8 }
 0x5c0   :  { %v3438_v35 = vpop.permute.xlu1 %3437 }
 0x5c2   :  { %3903 = vrot.lane.b32.xlu1 %v7158_v33, %s7039_s9 }
 0x5c4   :  { %v3436_v38 = vpop.permute.xlu1 %3435 }
 0x5c6   :  { %4069 = vrot.lane.b32.xlu1 %v7142_v19, %s7040_s10 }
 0x5c8   :  { %v3594_v40 = vpop.permute.xlu1 %3593 }
 0x5ca   :  { %4221 = vrot.lane.b32.xlu1 %v7148_v23, %s7040_s10 }
 0x5ce   :  { %4297 = vrot.lane.b32.xlu1 %v7146_v21, %s7040_s10 }
 0x5d2   :  { %4449 = vrot.lane.b32.xlu1 %v7152_v25, %s7040_s10 }
 0x5d6   :  { %4601 = vrot.lane.b32.xlu1 %v7158_v33, %s7040_s10 }
 0x5da   :  { %4798 = vrot.lane.b32.xlu1 %v7140_v17, %s7041_s11 }
 0x5de   :  { %4796 = vrot.lane.b32.xlu1 %v7140_v17, %s7042_s12 }
 0x5f1   :  { %v2670_v42 = vpop.xlane.xlu1 %2669 }
 0x5f2   :  { %6951 = vrcp.f32 %v2670_v42 }
 0x5f5   :  { %v2676_v43 = vpop.xlane.xlu1 %2675 }
 0x5f6   :  { %6953 = vrcp.f32 %v2676_v43 }
 0x5f9   :  { %v2682_v16 = vpop.xlane.xlu1 %2681 }
 0x5fa   :  { %6955 = vrcp.f32 %v2682_v16  ;;  %v2679_v44 = vpop.xlane.xlu0 %2678 }
 0x5fb   :  { %6957 = vrcp.f32 %v2679_v44 }
 0x5fc   :  { %v6952_v46 = vpop.eup %6951 }
 0x5fd   :  { %v2693_v47 = vmul.f32 %v6952_v46, %v7940_v55 }
 0x5fe   :  { %v2685_v48 = vpop.xlane.xlu0 %2684 }
 0x5ff   :  { %6959 = vrcp.f32 %v2685_v48  ;;  %6648 = vmatmul.mubr.msk.f32.vlgmr.msra.gmra.mrb[24].mxu1 %vm8712_vm13, %v2693_v47  ;;  %vm8726_vm13 = vmmov %vm8667_vm0 }
 0x600   :  { %v6954_v49 = vpop.eup %6953  ;;  %6656 = vmatpush3.msra.mxu1 %v2861_v29  ;;  %6657 = vmatprep.mubr.msk.f32.mxu1 %vm8666_vm1, %v7029_v14 }
 0x601   :  { %6665 = vmatprep.subr.mxu1 %v7029_v14  ;;  %v2697_v20 = vmul.f32 %v6954_v49, %v7944_v60 }
 0x602   :  { %v2691_v51 = vpop.xlane.xlu0 %2690 }
 0x603   :  { %6961 = vrcp.f32 %v2691_v51  ;;  %6658 = vmatmul.mubr.msk.f32.vlgmr.msra.gmra.mrb[26].mxu1 %vm8713_vm11, %v2697_v20  ;;  %vm8727_vm11 = vmmov %vm8667_vm0 }
 0x604   :  { %v6956_v37 = vpop.eup %6955  ;;  %6666 = vmatpush3.msra.mxu1 %v7969_v6  ;;  %6667 = vmatprep.mubr.msk.f32.mxu1 %vm8666_vm1, %v7029_v14 }
 0x605   :  { %v6958_v55 = vpop.eup %6957  ;;  %6675 = vmatprep.subr.mxu1 %v7029_v14  ;;  %v2701_v57 = vmul.f32 %v6956_v37, %v7949_v53 }
 0x606   :  { %v2699_v39 = vmul.f32 %v6958_v55, %v7951_v41  ;;  %v3514_v52 = vpop.permute.xlu0 %3513 }
 0x607   :  { %6668 = vmatmul.mubr.msk.f32.vlgmr.msra.gmra.mrb[28].mxu1 %vm8714_vm2, %v2701_v57  ;;  %vm8728_vm2 = vmmov %vm8667_vm0 }
 0x608   :  { %6663 = vmatmul.mubr.msk.f32.vlgmr.msra.gmra.mrb[34].mxu0 %vm8715_vm8, %v2699_v39  ;;  %6676 = vmatpush3.msra.mxu1 %v7974_v11  ;;  %vm8729_vm8 = vmmov %vm8667_vm0 }
 0x609   :  { %v6960_v59 = vpop.eup %6959  ;;  %6671 = vmatpush3.msra.mxu0 %v3089_v32  ;;  %6672 = vmatprep.mubr.msk.f32.mxu0 %vm8666_vm1, %v7029_v14 }
 0x60a   :  { %6680 = vmatprep.subr.mxu0 %v7029_v14  ;;  %v2703_v60 = vmul.f32 %v6960_v59, %v7957_v54  ;;  %6677 = vmatprep.mubr.msk.f32.mxu1 %vm8666_vm1, %v7029_v14  ;;  %v3672_v53 = vpop.permute.xlu0 %3671 }
 0x60b   :  { %6685 = vmatprep.subr.mxu1 %v7029_v14 }
 0x60c   :  { %6673 = vmatmul.mubr.msk.f32.vlgmr.msra.gmra.mrb[36].mxu0 %vm8716_vm14, %v2703_v60  ;;  %vm8730_vm14 = vmmov %vm8667_vm0 }
 0x60d   :  { %v6962_v61 = vpop.eup %6961  ;;  %6681 = vmatpush3.msra.mxu0 %v3241_v34  ;;  %6682 = vmatprep.mubr.msk.f32.mxu0 %vm8666_vm1, %v7029_v14 }
 0x60e   :  { %v2707_v62 = vmul.f32 %v6962_v61, %v7961_v4  ;;  %6690 = vmatprep.subr.mxu0 %v7029_v14  ;;  %v3670_v63 = vpop.permute.xlu0 %3669 }
 0x610   :  { %6683 = vmatmul.mubr.msk.f32.vlgmr.msra.gmra.mrb[38].mxu0 %vm8717_vm3, %v2707_v62  ;;  %vm8731_vm3 = vmmov %vm8667_vm0 }
 0x611   :  { %6692 = vmatprep.mubr.msk.f32.mxu0 %vm8666_vm1, %v7029_v14 }
 0x612   :  { %v3828_v3 = vpop.permute.xlu0 %3827 }
 0x614   :  { %6691 = vmatpush3.xpose.msk.msra.mxu0 %vm8718_vm6, %v3438_v35  ;;  %vm8732_vm6 = vmmov %vm8667_vm0 }
 0x615   :  { %6700 = vmatprep.subr.mxu0 %v7029_v14 }
 0x616   :  { %v3826_v7 = vpop.permute.xlu0 %3825 }
 0x617   :  { %6693 = vmatmul.mubr.msk.f32.vlgmr.msra.gmra.mrb[40].mxu0 %vm8719_vm5, %v3436_v38  ;;  %vm8733_vm5 = vmmov %vm8667_vm0 }
 0x618   :  { %6701 = vmatpush3.xpose.msk.msra.mxu0 %vm8720_vm10, %v3594_v40  ;;  %6702 = vmatprep.mubr.msk.f32.mxu0 %vm8666_vm1, %v7029_v14  ;;  %vm8734_vm10 = vmmov %vm8667_vm0 }
 0x619   :  { %6710 = vmatprep.subr.mxu0 %v7029_v14 }
 0x61a   :  { %v4146_v11 = vpop.permute.xlu0 %4145 }
 0x62e   :  { %v2688_v41 = vpop.xlane.xlu1 %2687 }
 0x62f   :  { %6963 = vrcp.f32 %v2688_v41 }
 0x632   :  { %v3592_v2 = vpop.permute.xlu1 %3591 }
 0x633   :  { %6703 = vmatmul.mubr.msk.f32.vlgmr.msra.gmra.mrb[42].mxu0 %vm8721_vm4, %v3592_v2  ;;  %vm8735_vm4 = vmmov %vm8667_vm0 }
 0x634   :  { %6712 = vmatprep.mubr.msk.f32.mxu0 %vm8666_vm1, %v7029_v14 }
 0x636   :  { %v3750_v54 = vpop.permute.xlu1 %3749 }
 0x637   :  { %6711 = vmatpush3.xpose.msk.msra.mxu0 %vm8722_vm15, %v3750_v54  ;;  %vm8736_vm15 = vmmov %vm8667_vm0 }
 0x638   :  { %6720 = vmatprep.subr.mxu0 %v7029_v14 }
 0x639   :  { %v6964_v4 = vpop.eup %6963 }
 0x63a   :  { %v3748_v5 = vpop.permute.xlu1 %3747  ;;  %v2705_v6 = vmul.f32 %v6964_v4, %v7982_v12 }
 0x63b   :  { %6713 = vmatmul.mubr.msk.f32.vlgmr.msra.gmra.mrb[44].mxu0 %vm8723_vm12, %v3748_v5  ;;  %vm8737_vm12 = vmmov %vm8667_vm0 }
 0x63c   :  { %6678 = vmatmul.mubr.msk.f32.vlgmr.msra.gmra.mrb[30].mxu1 %vm8667_vm0, %v2705_v6  ;;  %6722 = vmatprep.mubr.msk.f32.mxu0 %vm8666_vm1, %v7029_v14 }
 0x63d   :  { %6686 = vmatpush3.xpose.msk.msra.mxu1 %vm8724_vm9, %v7980_v45  ;;  %6687 = vmatprep.mubr.msk.f32.mxu1 %vm8666_vm1, %v7029_v14  ;;  %vm8738_vm9 = vmmov %vm8667_vm0 }
 0x63e   :  { %v3906_v8 = vpop.permute.xlu1 %3905  ;;  %6695 = vmatprep.subr.mxu1 %v7029_v14 }
 0x63f   :  { %6721 = vmatpush3.xpose.msk.msra.mxu0 %vm8725_vm7, %v3906_v8  ;;  %vm8739_vm7 = vmmov %vm8667_vm0 }
 0x640   :  { %6688 = vmatmul.mubr.msk.f32.vlgmr.msra.gmra.mrb[32].mxu1 %vm8726_vm13, %v7988_v15  ;;  %6730 = vmatprep.subr.mxu0 %v7029_v14  ;;  %vm8740_vm13 = vmmov %vm8667_vm0 }
 0x641   :  { %6696 = vmatpush3.xpose.msk.msra.mxu1 %vm8727_vm11, %v7994_v18  ;;  %6697 = vmatprep.mubr.msk.f32.mxu1 %vm8666_vm1, %v7029_v14  ;;  %vm8741_vm11 = vmmov %vm8667_vm0 }
 0x642   :  { %v3904_v10 = vpop.permute.xlu1 %3903  ;;  %6705 = vmatprep.subr.mxu1 %v7029_v14 }
 0x643   :  { %6723 = vmatmul.mubr.msk.f32.vlgmr.msra.gmra.mrb[46].mxu0 %vm8728_vm2, %v3904_v10  ;;  %vm8742_vm2 = vmmov %vm8667_vm0 }
 0x644   :  { %6731 = vmatpush3.msra.mxu0 %v4146_v11  ;;  %6698 = vmatmul.mubr.msk.f32.vlgmr.msra.gmra.mrb[34].mxu1 %vm8729_vm8, %v3514_v52  ;;  %vm8743_vm8 = vmmov %vm8667_vm0 }
 0x645   :  { %6706 = vmatpush3.xpose.msk.msra.mxu1 %vm8730_vm14, %v3672_v53  ;;  %6707 = vmatprep.mubr.msk.f32.mxu1 %vm8666_vm1, %v7029_v14  ;;  %vm8744_vm14 = vmmov %vm8667_vm0 }
 0x646   :  { %6715 = vmatprep.subr.mxu1 %v7029_v14  ;;  %6732 = vmatprep.mubr.msk.f32.mxu0 %vm8666_vm1, %v7029_v14  ;;  %v4070_v45 = vpop.permute.xlu1 %4069 }
 0x647   :  { %6740 = vmatprep.subr.mxu0 %v7029_v14 }
 0x648   :  { %6708 = vmatmul.mubr.msk.f32.vlgmr.msra.gmra.mrb[36].mxu1 %vm8731_vm3, %v3670_v63  ;;  %vm8745_vm3 = vmmov %vm8667_vm0 }
 0x649   :  { %6716 = vmatpush3.xpose.msk.msra.mxu1 %vm8732_vm6, %v3828_v3  ;;  %6717 = vmatprep.mubr.msk.f32.mxu1 %vm8666_vm1, %v7029_v14  ;;  %vm8746_vm6 = vmmov %vm8667_vm0 }
 0x64a   :  { %6725 = vmatprep.subr.mxu1 %v7029_v14 }
 0x64c   :  { %6718 = vmatmul.mubr.msk.f32.vlgmr.msra.gmra.mrb[38].mxu1 %vm8733_vm5, %v3826_v7  ;;  %vm8747_vm5 = vmmov %vm8667_vm0 }
 0x64d   :  { %6726 = vmatpush3.msra.mxu1 %v4070_v45  ;;  %6727 = vmatprep.mubr.msk.f32.mxu1 %vm8666_vm1, %v7029_v14 }
 0x64e   :  { %6735 = vmatprep.subr.mxu1 %v7029_v14 }
 0x68d   :  { %v8109_v12 = vpop.f32.mrb[32].mxu0 }
 0x68e   :  { %v6654_v13 = vpop.f32.mrb[33].mxu0 }
 0x6d2   :  { %v8111_v15 = vpop.f32.mrb[24].mxu1 }
 0x6d3   :  { %v6649_v18 = vpop.f32.mrb[25].mxu1 }
 0x6d4   :  { %v8151_v18 = vpop.permute.xlu1 %4221 }
 0x6d6   :  { %v8113_v22 = vpop.f32.mrb[26].mxu1 }
 0x6d7   :  { %v6659_v29 = vpop.f32.mrb[27].mxu1 }
 0x6d8   :  { %v8153_v29 = vpop.permute.xlu1 %4297 }
 0x6da   :  { %v8115_v30 = vpop.f32.mrb[28].mxu1 }
 0x6db   :  { %v8117_v26 = vpop.f32.mrb[34].mxu0  ;;  %v6669_v28 = vpop.f32.mrb[29].mxu1 }
 0x6dc   :  { %v6664_v32 = vpop.f32.mrb[35].mxu0  ;;  %v8155_v28 = vpop.permute.xlu1 %4449 }
 0x6df   :  { %v8119_v34 = vpop.f32.mrb[36].mxu0 }
 0x6e0   :  { %v6674_v35 = vpop.f32.mrb[37].mxu0  ;;  %v8157_v32 = vpop.permute.xlu1 %4601 }
 0x6e3   :  { %v8121_v38 = vpop.f32.mrb[38].mxu0 }
 0x6e4   :  { %v6684_v40 = vpop.f32.mrb[39].mxu0  ;;  %v8159_v35 = vpop.permute.xlu1 %4798 }
 0x6e8   :  { %v8161_v40 = vpop.permute.xlu1 %4796 }
 0x6ea   :  { %v3509_v42 = vpop.f32.mrb[40].mxu0 }
 0x6eb   :  { %v3510_v43 = vadd.f32 %v3509_v42, %v7660_v58  ;;  %v6694_v16 = vpop.f32.mrb[41].mxu0 }
 0x6ed   :  { %v3984_v44 = vsel %vm8734_vm10, %v3510_v43, -inf  ;;  %vm8748_vm10 = vmmov %vm8667_vm0 }
 0x6ee   :  { %3985 = vmax.xlane.f32.xlu1 %v3984_v44 }
 0x706   :  { %v3665_v46 = vpop.f32.mrb[42].mxu0 }
 0x707   :  { %v6704_v47 = vpop.f32.mrb[43].mxu0  ;;  %v3666_v53 = vadd.f32 %v3665_v46, %v7669_v1 }
 0x709   :  { %v3990_v4 = vsel %vm8737_vm12, %v3666_v53, -inf  ;;  %vm8751_vm12 = vmmov %vm8667_vm0 }
 0x70e   :  { %v3821_v48 = vpop.f32.mrb[44].mxu0 }
 0x70f   :  { %v8125_v49 = vpop.f32.mrb[30].mxu1  ;;  %v6714_v20 = vpop.f32.mrb[45].mxu0  ;;  %v3822_v3 = vadd.f32 %v3821_v48, %v7677_v0 }
 0x710   :  { %v6679_v51 = vpop.f32.mrb[31].mxu1  ;;  %v8167_v48 = vpop.permute.xlu0 %4373 }
 0x711   :  { %v3996_v11 = vsel %vm8738_vm9, %v3822_v3, -inf  ;;  %vm8752_vm9 = vmmov %vm8667_vm0 }
 0x713   :  { %v3431_v37 = vpop.f32.mrb[32].mxu1 }
 0x714   :  { %v3432_v55 = vadd.f32 %v3431_v37, %v7645_v50  ;;  %v6689_v57 = vpop.f32.mrb[33].mxu1  ;;  %v8169_v20 = vpop.permute.xlu0 %4525 }
 0x716   :  { %v3977_v39 = vpop.f32.mrb[46].mxu0  ;;  %v3981_v59 = vsel %vm8735_vm4, %v3432_v55, -inf  ;;  %vm8749_vm4 = vmmov %vm8667_vm0 }
 0x717   :  { %3982 = vmax.xlane.f32.xlu0 %v3981_v59  ;;  %v3587_v60 = vpop.f32.mrb[34].mxu1  ;;  %v6724_v61 = vpop.f32.mrb[47].mxu0  ;;  %v8140_v10 = vadd.f32 %v3977_v39, %v7685_v9 }
 0x718   :  { %v3588_v62 = vadd.f32 %v3587_v60, %v7653_v56  ;;  %v6699_v52 = vpop.f32.mrb[35].mxu1  ;;  %v8171_v51 = vpop.permute.xlu0 %4720 }
 0x719   :  { %v4002_v13 = vsel %vm8740_vm13, %v8140_v10, -inf  ;;  %vm8754_vm13 = vmmov %vm8667_vm0 }
 0x71a   :  { %v3987_v41 = vsel %vm8736_vm15, %v3588_v62, -inf  ;;  %vm8750_vm15 = vmmov %vm8667_vm0 }
 0x71b   :  { %3988 = vmax.xlane.f32.xlu0 %v3987_v41  ;;  %v3743_v63 = vpop.f32.mrb[36].mxu1 }
 0x71c   :  { %v3744_v2 = vadd.f32 %v3743_v63, %v7697_v24  ;;  %v6709_v54 = vpop.f32.mrb[37].mxu1  ;;  %v8173_v37 = vpop.permute.xlu0 %4718 }
 0x71e   :  { %v3993_v5 = vsel %vm8667_vm0, %v3744_v2, -inf }
 0x71f   :  { %3991 = vmax.xlane.f32.xlu0 %v3990_v4  ;;  %3994 = vmax.xlane.f32.xlu1 %v3993_v5  ;;  %v3899_v6 = vpop.f32.mrb[38].mxu1 }
 0x720   :  { %v8137_v7 = vadd.f32 %v3899_v6, %v7721_v31  ;;  %v6719_v8 = vpop.f32.mrb[39].mxu1 }
 0x722   :  { %v3999_v45 = vsel %vm8739_vm7, %v8137_v7, -inf  ;;  %vm8753_vm7 = vmmov %vm8667_vm0 }
 0x723   :  { %3997 = vmax.xlane.f32.xlu0 %v3996_v11  ;;  %4000 = vmax.xlane.f32.xlu1 %v3999_v45 }
 0x727   :  { %4003 = vmax.xlane.f32.xlu0 %v4002_v13 }
 0x734   :  { %4954 = vrot.lane.b32.xlu1 %v7146_v21, %s7041_s11 }
 0x73d   :  { %4876 = vrot.lane.b32.xlu0 %v7148_v23, %s7041_s11 }
 0x77b   :  { %v3986_v42 = vpop.xlane.xlu1 %3985 }
 0x77c   :  { %v4006_v16 = vsub.f32 %v3510_v43, %v3986_v42 }
 0x77e   :  { %v4015_v44 = vmul.f32 1.442695, %v4006_v16 }
 0x780   :  { %6965 = vpow2.f32 %v4015_v44 }
 0x78a   :  { %v8163_v46 = vpop.eup %6965 }
 0x78b   :  { %v4032_v47 = vsel %vm8741_vm11, %v8163_v46, 0.0  ;;  %vm8755_vm11 = vmmov %vm8667_vm0 }
 0x78c   :  { %4033 = vadd.xlane.f32.xlu0 %v4032_v47 }
 0x7a4   :  { %v3983_v57 = vpop.xlane.xlu0 %3982 }
 0x7a5   :  { %v4005_v39 = vsub.f32 %v3432_v55, %v3983_v57 }
 0x7a7   :  { %v4013_v59 = vmul.f32 1.442695, %v4005_v39 }
 0x7a8   :  { %v3989_v43 = vpop.xlane.xlu0 %3988 }
 0x7a9   :  { %6967 = vpow2.f32 %v4013_v59  ;;  %v4007_v60 = vsub.f32 %v3588_v62, %v3989_v43 }
 0x7ab   :  { %v4017_v61 = vmul.f32 1.442695, %v4007_v60 }
 0x7ac   :  { %v3995_v52 = vpop.xlane.xlu1 %3994  ;;  %v3992_v41 = vpop.xlane.xlu0 %3991 }
 0x7ad   :  { %6969 = vpow2.f32 %v4017_v61  ;;  %v4009_v63 = vsub.f32 %v3744_v2, %v3995_v52  ;;  %v4008_v54 = vsub.f32 %v3666_v53, %v3992_v41 }
 0x7af   :  { %v4021_v4 = vmul.f32 1.442695, %v4009_v63  ;;  %v4019_v5 = vmul.f32 1.442695, %v4008_v54 }
 0x7b0   :  { %v3998_v6 = vpop.xlane.xlu0 %3997  ;;  %v4001_v47 = vpop.xlane.xlu1 %4000 }
 0x7b1   :  { %6971 = vpow2.f32 %v4021_v4  ;;  %v4010_v8 = vsub.f32 %v3822_v3, %v3998_v6  ;;  %v4011_v57 = vsub.f32 %v8137_v7, %v4001_v47 }
 0x7b2   :  { %6973 = vpow2.f32 %v4019_v5 }
 0x7b3   :  { %v6968_v11 = vpop.eup %6967  ;;  %v4023_v45 = vmul.f32 1.442695, %v4010_v8  ;;  %v4025_v59 = vmul.f32 1.442695, %v4011_v57 }
 0x7b4   :  { %v4029_v55 = vsel %vm8742_vm2, %v6968_v11, 0.0  ;;  %v4004_v39 = vpop.xlane.xlu0 %4003  ;;  %v8227_v5 = vpop.permute.xlu1 %4954  ;;  %vm8756_vm2 = vmmov %vm8667_vm0 }
 0x7b5   :  { %4030 = vadd.xlane.f32.xlu1 %v4029_v55  ;;  %6975 = vpow2.f32 %v4023_v45  ;;  %v4012_v43 = vsub.f32 %v8140_v10, %v4004_v39 }
 0x7b6   :  { %6977 = vpow2.f32 %v4025_v59 }
 0x7b7   :  { %v6970_v13 = vpop.eup %6969  ;;  %v4027_v60 = vmul.f32 1.442695, %v4012_v43 }
 0x7b8   :  { %v4035_v62 = vsel %vm8743_vm8, %v6970_v13, 0.0  ;;  %v8215_v7 = vpop.permute.xlu0 %4876  ;;  %vm8757_vm8 = vmmov %vm8667_vm0 }
 0x7b9   :  { %4036 = vadd.xlane.f32.xlu1 %v4035_v62  ;;  %6979 = vpow2.f32 %v4027_v60 }
 0x7bb   :  { %v8177_v42 = vpop.eup %6971 }
 0x7bc   :  { %v8179_v2 = vpop.eup %6973  ;;  %v4041_v53 = vsel %vm8744_vm14, %v8177_v42, 0.0  ;;  %vm8758_vm14 = vmmov %vm8667_vm0 }
 0x7bd   :  { %4042 = vadd.xlane.f32.xlu1 %v4041_v53  ;;  %v4038_v3 = vsel %vm8745_vm3, %v8179_v2, 0.0  ;;  %vm8759_vm3 = vmmov %vm8667_vm0 }
 0x7be   :  { %4039 = vadd.xlane.f32.xlu0 %v4038_v3 }
 0x7bf   :  { %v8185_v16 = vpop.eup %6975 }
 0x7c0   :  { %v4044_v44 = vsel %vm8746_vm6, %v8185_v16, 0.0  ;;  %v8195_v61 = vpop.eup %6977  ;;  %vm8760_vm6 = vmmov %vm8667_vm0 }
 0x7c1   :  { %v4047_v52 = vsel %vm8747_vm5, %v8195_v61, 0.0  ;;  %vm8761_vm5 = vmmov %vm8667_vm0 }
 0x7c2   :  { %4045 = vadd.xlane.f32.xlu0 %v4044_v44 }
 0x7c3   :  { %v8199_v41 = vpop.eup %6979 }
 0x7c4   :  { %v4050_v63 = vsel %vm8748_vm10, %v8199_v41, 0.0  ;;  %vm8762_vm10 = vmmov %vm8667_vm0 }
 0x7ce   :  { %4952 = vrot.lane.b32.xlu1 %v7146_v21, %s7042_s12 }
 0x7d8   :  { %4874 = vrot.lane.b32.xlu0 %v7148_v23, %s7042_s12 }
 0x7f2   :  { %4048 = vadd.xlane.f32.xlu1 %v4047_v52 }
 0x7f7   :  { %4051 = vadd.xlane.f32.xlu0 %v4050_v63 }
 0x803   :  { %5110 = vrot.lane.b32.xlu1 %v7152_v25, %s7041_s11 }
 0x807   :  { %5108 = vrot.lane.b32.xlu1 %v7152_v25, %s7042_s12 }
 0x80b   :  { %5266 = vrot.lane.b32.xlu1 %v7158_v33, %s7041_s11 }
 0x80d   :  { %5032 = vrot.lane.b32.xlu0 %v7154_v27, %s7041_s11 }
 0x80f   :  { %5264 = vrot.lane.b32.xlu1 %v7158_v33, %s7042_s12 }
 0x811   :  { %5030 = vrot.lane.b32.xlu0 %v7154_v27, %s7042_s12 }
 0x815   :  { %5188 = vrot.lane.b32.xlu0 %v7163_v36, %s7041_s11 }
 0x819   :  { %v4034_v10 = vpop.xlane.xlu0 %4033  ;;  %5186 = vrot.lane.b32.xlu0 %v7163_v36, %s7042_s12 }
 0x81a   :  { %6981 = vrcp.f32 %v4034_v10 }
 0x824   :  { %v6982_v54 = vpop.eup %6981 }
 0x825   :  { %v4056_v4 = vmul.f32 %v6982_v54, %v8163_v46 }
 0x827   :  { %6733 = vmatmul.mubr.msk.f32.vlgmr.msra.gmra.mrb[48].mxu0 %vm8749_vm4, %v4056_v4  ;;  %vm8763_vm4 = vmmov %vm8667_vm0 }
 0x828   :  { %6741 = vmatpush3.msra.mxu0 %v8153_v29  ;;  %6742 = vmatprep.mubr.msk.f32.mxu0 %vm8666_vm1, %v7029_v14 }
 0x829   :  { %6750 = vmatprep.subr.mxu0 %v7029_v14 }
 0x842   :  { %v4031_v6 = vpop.xlane.xlu1 %4030 }
 0x843   :  { %6983 = vrcp.f32 %v4031_v6 }
 0x846   :  { %v4037_v8 = vpop.xlane.xlu1 %4036 }
 0x847   :  { %6985 = vrcp.f32 %v4037_v8 }
 0x84a   :  { %v4043_v45 = vpop.xlane.xlu1 %4042 }
 0x84b   :  { %6987 = vrcp.f32 %v4043_v45  ;;  %v4040_v55 = vpop.xlane.xlu0 %4039 }
 0x84c   :  { %6989 = vrcp.f32 %v4040_v55 }
 0x84d   :  { %v6984_v46 = vpop.eup %6983 }
 0x84e   :  { %v4054_v62 = vmul.f32 %v6984_v46, %v6968_v11 }
 0x84f   :  { %v4046_v53 = vpop.xlane.xlu0 %4045 }
 0x850   :  { %6991 = vrcp.f32 %v4046_v53  ;;  %6728 = vmatmul.mubr.msk.f32.vlgmr.msra.gmra.mrb[40].mxu1 %vm8750_vm15, %v4054_v62  ;;  %vm8764_vm15 = vmmov %vm8667_vm0 }
 0x851   :  { %v6986_v29 = vpop.eup %6985  ;;  %6736 = vmatpush3.msra.mxu1 %v8151_v18  ;;  %6737 = vmatprep.mubr.msk.f32.mxu1 %vm8666_vm1, %v7029_v14 }
 0x852   :  { %v4058_v3 = vmul.f32 %v6986_v29, %v6970_v13  ;;  %6745 = vmatprep.subr.mxu1 %v7029_v14 }
 0x854   :  { %6738 = vmatmul.mubr.msk.f32.vlgmr.msra.gmra.mrb[42].mxu1 %vm8751_vm12, %v4058_v3  ;;  %vm8765_vm12 = vmmov %vm8667_vm0 }
 0x855   :  { %v6988_v44 = vpop.eup %6987  ;;  %6746 = vmatpush3.msra.mxu1 %v8167_v48  ;;  %6747 = vmatprep.mubr.msk.f32.mxu1 %vm8666_vm1, %v7029_v14 }
 0x856   :  { %v6990_v11 = vpop.eup %6989  ;;  %v4062_v47 = vmul.f32 %v6988_v44, %v8177_v42  ;;  %6755 = vmatprep.subr.mxu1 %v7029_v14  ;;  %v4875_v42 = vpop.permute.xlu0 %4874 }
 0x857   :  { %v4060_v18 = vmul.f32 %v6990_v11, %v8179_v2 }
 0x858   :  { %6748 = vmatmul.mubr.msk.f32.vlgmr.msra.gmra.mrb[44].mxu1 %vm8667_vm0, %v4062_v47 }
 0x859   :  { %6743 = vmatmul.mubr.msk.f32.vlgmr.msra.gmra.mrb[50].mxu0 %vm8752_vm9, %v4060_v18  ;;  %6756 = vmatpush3.msra.mxu1 %v8169_v20  ;;  %vm8766_vm9 = vmmov %vm8667_vm0 }
 0x85a   :  { %v6992_v13 = vpop.eup %6991  ;;  %6751 = vmatpush3.msra.mxu0 %v8155_v28  ;;  %6752 = vmatprep.mubr.msk.f32.mxu0 %vm8666_vm1, %v7029_v14  ;;  %v4953_v28 = vpop.permute.xlu1 %4952 }
 0x85b   :  { %v4064_v48 = vmul.f32 %v6992_v13, %v8185_v16  ;;  %6760 = vmatprep.subr.mxu0 %v7029_v14  ;;  %6757 = vmatprep.mubr.msk.f32.mxu1 %vm8666_vm1, %v7029_v14 }
 0x85c   :  { %6765 = vmatprep.subr.mxu1 %v7029_v14 }
 0x85d   :  { %6753 = vmatmul.mubr.msk.f32.vlgmr.msra.gmra.mrb[52].mxu0 %vm8753_vm7, %v4064_v48  ;;  %vm8767_vm7 = vmmov %vm8667_vm0 }
 0x85e   :  { %6761 = vmatpush3.msra.mxu0 %v8157_v32  ;;  %6762 = vmatprep.mubr.msk.f32.mxu0 %vm8666_vm1, %v7029_v14 }
 0x85f   :  { %6770 = vmatprep.subr.mxu0 %v7029_v14 }
 0x87f   :  { %v4049_v20 = vpop.xlane.xlu1 %4048 }
 0x880   :  { %6993 = vrcp.f32 %v4049_v20 }
 0x883   :  { %v5111_v59 = vpop.permute.xlu1 %5110 }
 0x884   :  { %v4052_v2 = vpop.xlane.xlu0 %4051 }
 0x885   :  { %6995 = vrcp.f32 %v4052_v2 }
 0x888   :  { %v5033_v57 = vpop.permute.xlu0 %5032 }
 0x88a   :  { %v6994_v16 = vpop.eup %6993 }
 0x88b   :  { %v4066_v39 = vmul.f32 %v6994_v16, %v8195_v61 }
 0x88c   :  { %v5031_v60 = vpop.permute.xlu0 %5030 }
 0x88d   :  { %6758 = vmatmul.mubr.msk.f32.vlgmr.msra.gmra.mrb[46].mxu1 %vm8754_vm13, %v4066_v39  ;;  %vm8768_vm13 = vmmov %vm8667_vm0 }
 0x88e   :  { %6766 = vmatpush3.xpose.msk.msra.mxu1 %vm8755_vm11, %v8171_v51  ;;  %6767 = vmatprep.mubr.msk.f32.mxu1 %vm8666_vm1, %v7029_v14  ;;  %v5109_v51 = vpop.permute.xlu1 %5108  ;;  %vm8769_vm11 = vmmov %vm8667_vm0 }
 0x88f   :  { %v6996_v32 = vpop.eup %6995  ;;  %6775 = vmatprep.subr.mxu1 %v7029_v14 }
 0x890   :  { %v4068_v43 = vmul.f32 %v6996_v32, %v8199_v41 }
 0x891   :  { %6768 = vmatmul.mubr.msk.f32.vlgmr.msra.gmra.mrb[48].mxu1 %vm8756_vm2, %v8173_v37  ;;  %v5189_v37 = vpop.permute.xlu0 %5188  ;;  %vm8770_vm2 = vmmov %vm8667_vm0 }
 0x892   :  { %6763 = vmatmul.mubr.msk.f32.vlgmr.msra.gmra.mrb[54].mxu0 %vm8757_vm8, %v4068_v43  ;;  %6776 = vmatpush3.xpose.msk.msra.mxu1 %vm8758_vm14, %v8215_v7  ;;  %vm8771_vm8 = vmmov %vm8667_vm0 }
 0x893   :  { %6771 = vmatpush3.xpose.msk.msra.mxu0 %vm8759_vm3, %v8159_v35  ;;  %6772 = vmatprep.mubr.msk.f32.mxu0 %vm8666_vm1, %v7029_v14  ;;  %v5267_v35 = vpop.permute.xlu1 %5266  ;;  %vm8772_vm14 = vmmov %vm8667_vm0 }
 0x894   :  { %6777 = vmatprep.mubr.msk.f32.mxu1 %vm8666_vm1, %v7029_v14  ;;  %6780 = vmatprep.subr.mxu0 %v7029_v14  ;;  %vm8773_vm3 = vmmov %vm8667_vm0 }
 0x895   :  { %6785 = vmatprep.subr.mxu1 %v7029_v14  ;;  %6778 = vmatmul.mubr.msk.f32.vlgmr.msra.gmra.mrb[50].mxu1 %vm8760_vm6, %v4875_v42  ;;  %vm8774_vm6 = vmmov %vm8667_vm0 }
 0x896   :  { %6773 = vmatmul.mubr.msk.f32.vlgmr.msra.gmra.mrb[56].mxu0 %vm8761_vm5, %v8161_v40  ;;  %6786 = vmatpush3.xpose.msk.msra.mxu1 %vm8762_vm10, %v5033_v57  ;;  %v5187_v40 = vpop.permute.xlu0 %5186  ;;  %vm8775_vm5 = vmmov %vm8667_vm0 }
 0x897   :  { %6781 = vmatpush3.xpose.msk.msra.mxu0 %vm8763_vm4, %v8227_v5  ;;  %6782 = vmatprep.mubr.msk.f32.mxu0 %vm8666_vm1, %v7029_v14  ;;  %v5265_v61 = vpop.permute.xlu1 %5264  ;;  %vm8776_vm10 = vmmov %vm8667_vm0 }
 0x898   :  { %6787 = vmatprep.mubr.msk.f32.mxu1 %vm8666_vm1, %v7029_v14  ;;  %6790 = vmatprep.subr.mxu0 %v7029_v14  ;;  %vm8777_vm4 = vmmov %vm8667_vm0 }
 0x899   :  { %6795 = vmatprep.subr.mxu1 %v7029_v14  ;;  %6788 = vmatmul.mubr.msk.f32.vlgmr.msra.gmra.mrb[52].mxu1 %vm8764_vm15, %v5031_v60  ;;  %vm8778_vm15 = vmmov %vm8667_vm0 }
 0x89a   :  { %6783 = vmatmul.mubr.msk.f32.vlgmr.msra.gmra.mrb[58].mxu0 %vm8765_vm12, %v4953_v28  ;;  %6796 = vmatpush3.xpose.msk.msra.mxu1 %vm8667_vm0, %v5189_v37  ;;  %vm8779_vm12 = vmmov %vm8667_vm0 }
 0x89b   :  { %6791 = vmatpush3.xpose.msk.msra.mxu0 %vm8766_vm9, %v5111_v59  ;;  %6792 = vmatprep.mubr.msk.f32.mxu0 %vm8666_vm1, %v7029_v14  ;;  %vm8780_vm9 = vmmov %vm8667_vm0 }
 0x89c   :  { %6797 = vmatprep.mubr.msk.f32.mxu1 %vm8666_vm1, %v7029_v14  ;;  %6800 = vmatprep.subr.mxu0 %v7029_v14 }
 0x89d   :  { %6798 = vmatmul.mubr.msk.f32.vlgmr.msra.gmra.mrb[54].mxu1 %vm8767_vm7, %v5187_v40  ;;  %6805 = vmatprep.subr.mxu1 %v7029_v14  ;;  %vm8781_vm7 = vmmov %vm8667_vm0 }
 0x89e   :  { %6793 = vmatmul.mubr.msk.f32.vlgmr.msra.gmra.mrb[60].mxu0 %vm8768_vm13, %v5109_v51  ;;  %6807 = vmatprep.mubr.msk.f32.mxu1 %vm8666_vm1, %v7029_v14  ;;  %vm8782_vm13 = vmmov %vm8667_vm0 }
 0x89f   :  { %6801 = vmatpush3.xpose.msk.msra.mxu0 %vm8769_vm11, %v5267_v35  ;;  %6802 = vmatprep.mubr.msk.f32.mxu0 %vm8666_vm1, %v7029_v14  ;;  %vm8783_vm11 = vmmov %vm8667_vm0 }
 0x8a0   :  { %6810 = vmatprep.subr.mxu0 %v7029_v14 }
 0x8a2   :  { %6803 = vmatmul.mubr.msk.f32.vlgmr.msra.gmra.mrb[62].mxu0 %vm8770_vm2, %v5265_v61  ;;  %vm8784_vm2 = vmmov %vm8667_vm0 }
 0x8a3   :  { %6812 = vmatprep.mubr.msk.f32.mxu0 %vm8666_vm1, %v7029_v14 }
 0x8fa   :  { %v8311_v52 = vpop.f32.mrb[48].mxu0 }
 0x8fb   :  { %v6734_v41 = vpop.f32.mrb[49].mxu0 }
 0x923   :  { %v8313_v63 = vpop.f32.mrb[40].mxu1 }
 0x924   :  { %v6729_v7 = vpop.f32.mrb[41].mxu1 }
 0x927   :  { %v8315_v10 = vpop.f32.mrb[42].mxu1 }
 0x928   :  { %v6739_v54 = vpop.f32.mrb[43].mxu1 }
 0x92b   :  { %v8317_v4 = vpop.f32.mrb[44].mxu1 }
 0x92c   :  { %v8319_v5 = vpop.f32.mrb[50].mxu0  ;;  %v6749_v6 = vpop.f32.mrb[45].mxu1 }
 0x92d   :  { %v6744_v8 = vpop.f32.mrb[51].mxu0 }
 0x930   :  { %v8321_v45 = vpop.f32.mrb[52].mxu0 }
 0x931   :  { %v6754_v55 = vpop.f32.mrb[53].mxu0 }
 0x960   :  { %v8323_v46 = vpop.f32.mrb[46].mxu1 }
 0x961   :  { %v6759_v62 = vpop.f32.mrb[47].mxu1 }
 0x964   :  { %v4792_v53 = vpop.f32.mrb[48].mxu1 }
 0x965   :  { %v8325_v29 = vpop.f32.mrb[54].mxu0  ;;  %v4793_v3 = vadd.f32 %v4792_v53, %v7645_v50  ;;  %v6769_v44 = vpop.f32.mrb[49].mxu1 }
 0x966   :  { %v6764_v11 = vpop.f32.mrb[55].mxu0 }
 0x967   :  { %v5342_v47 = vsel %vm8771_vm8, %v4793_v3, -inf  ;;  %vm8785_vm8 = vmmov %vm8667_vm0 }
 0x968   :  { %5343 = vmax.xlane.f32.xlu0 %v5342_v47  ;;  %v4948_v18 = vpop.f32.mrb[50].mxu1 }
 0x969   :  { %v4870_v13 = vpop.f32.mrb[56].mxu0  ;;  %v4949_v48 = vadd.f32 %v4948_v18, %v7653_v56  ;;  %v6779_v28 = vpop.f32.mrb[51].mxu1 }
 0x96a   :  { %v4871_v20 = vadd.f32 %v4870_v13, %v7660_v58  ;;  %v6774_v42 = vpop.f32.mrb[57].mxu0 }
 0x96b   :  { %v5348_v2 = vsel %vm8772_vm14, %v4949_v48, -inf  ;;  %vm8786_vm14 = vmmov %vm8667_vm0 }
 0x96c   :  { %5349 = vmax.xlane.f32.xlu0 %v5348_v2  ;;  %v5345_v16 = vsel %vm8773_vm3, %v4871_v20, -inf  ;;  %v5104_v57 = vpop.f32.mrb[52].mxu1  ;;  %vm8787_vm3 = vmmov %vm8667_vm0 }
 0x96d   :  { %5346 = vmax.xlane.f32.xlu1 %v5345_v16  ;;  %v5026_v50 = vpop.f32.mrb[58].mxu0  ;;  %v5105_v39 = vadd.f32 %v5104_v57, %v7697_v24  ;;  %v6789_v32 = vpop.f32.mrb[53].mxu1 }
 0x96e   :  { %v5027_v59 = vadd.f32 %v5026_v50, %v7669_v1  ;;  %v6784_v43 = vpop.f32.mrb[59].mxu0 }
 0x96f   :  { %v5354_v56 = vsel %vm8774_vm6, %v5105_v39, -inf  ;;  %vm8788_vm6 = vmmov %vm8667_vm0 }
 0x970   :  { %v5351_v60 = vsel %vm8775_vm5, %v5027_v59, -inf  ;;  %v5260_v58 = vpop.f32.mrb[54].mxu1  ;;  %vm3348_vm5 = vcmask 130112  }
 0x971   :  { %5352 = vmax.xlane.f32.xlu0 %v5351_v60  ;;  %v5182_v51 = vpop.f32.mrb[60].mxu0  ;;  %5355 = vmax.xlane.f32.xlu1 %v5354_v56  ;;  %v5261_v37 = vadd.f32 %v5260_v58, %v7721_v31  ;;  %v6799_v35 = vpop.f32.mrb[55].mxu1 }
 0x972   :  { %v5183_v40 = vadd.f32 %v5182_v51, %v7677_v0  ;;  %v6794_v61 = vpop.f32.mrb[61].mxu0 }
 0x973   :  { %v5360_v24 = vsel %vm8776_vm10, %v5261_v37, -inf  ;;  %vm8789_vm10 = vmmov %vm8667_vm0 }
 0x974   :  { %v5357_v41 = vsel %vm8777_vm4, %v5183_v40, -inf  ;;  %vm4709_vm4 = vcmask 195712  }
 0x975   :  { %5358 = vmax.xlane.f32.xlu0 %v5357_v41  ;;  %v5338_v1 = vpop.f32.mrb[62].mxu0  ;;  %5361 = vmax.xlane.f32.xlu1 %v5360_v24 }
 0x976   :  { %v5339_v7 = vadd.f32 %v5338_v1, %v7685_v9  ;;  %v6804_v54 = vpop.f32.mrb[63].mxu0 }
 0x978   :  { %v5363_v6 = vsel %vm8778_vm15, %v5339_v7, -inf  ;;  %vm8790_vm15 = vmmov %vm8667_vm0 }
 0x979   :  { %5364 = vmax.xlane.f32.xlu0 %v5363_v6 }
 0x986   :  { %5430 = vrot.lane.b32.xlu1 %v7142_v19, %s7043_s13 }
 0x98a   :  { %5582 = vrot.lane.b32.xlu1 %v7148_v23, %s7043_s13 }
 0x98e   :  { %5658 = vrot.lane.b32.xlu1 %v7146_v21, %s7043_s13 }
 0x98f   :  { %5506 = vrot.lane.b32.xlu0 %v7140_v17, %s7043_s13 }
 0x992   :  { %5810 = vrot.lane.b32.xlu1 %v7152_v25, %s7043_s13 }
 0x993   :  { %5734 = vrot.lane.b32.xlu0 %v7154_v27, %s7043_s13 }
 0x9f5   :  { %v5344_v0 = vpop.xlane.xlu0 %5343 }
 0x9f6   :  { %v5366_v9 = vsub.f32 %v4793_v3, %v5344_v0 }
 0x9f8   :  { %v5374_v31 = vmul.f32 1.442695, %v5366_v9 }
 0x9f9   :  { %v5350_v8 = vpop.xlane.xlu0 %5349 }
 0x9fa   :  { %6997 = vpow2.f32 %v5374_v31  ;;  %v5347_v19 = vpop.xlane.xlu1 %5346  ;;  %v5368_v55 = vsub.f32 %v4949_v48, %v5350_v8 }
 0x9fb   :  { %v5367_v23 = vsub.f32 %v4871_v20, %v5347_v19 }
 0x9fc   :  { %v5378_v62 = vmul.f32 1.442695, %v5368_v55 }
 0x9fd   :  { %v5376_v53 = vmul.f32 1.442695, %v5367_v23 }
 0x9fe   :  { %6999 = vpow2.f32 %v5378_v62  ;;  %v5356_v21 = vpop.xlane.xlu1 %5355  ;;  %v5353_v44 = vpop.xlane.xlu0 %5352 }
 0x9ff   :  { %7001 = vpow2.f32 %v5376_v53  ;;  %v5370_v17 = vsub.f32 %v5105_v39, %v5356_v21  ;;  %v5369_v11 = vsub.f32 %v5027_v59, %v5353_v44 }
 0xa01   :  { %v5382_v25 = vmul.f32 1.442695, %v5370_v17  ;;  %v5380_v47 = vmul.f32 1.442695, %v5369_v11 }
 0xa02   :  { %v5362_v18 = vpop.xlane.xlu1 %5361  ;;  %v5359_v27 = vpop.xlane.xlu0 %5358 }
 0xa03   :  { %7003 = vpow2.f32 %v5382_v25  ;;  %v5372_v3 = vsub.f32 %v5261_v37, %v5362_v18  ;;  %v5371_v13 = vsub.f32 %v5183_v40, %v5359_v27 }
 0xa04   :  { %v8355_v28 = vpop.eup %6997  ;;  %7005 = vpow2.f32 %v5380_v47 }
 0xa05   :  { %v5386_v48 = vmul.f32 1.442695, %v5372_v3  ;;  %v5384_v20 = vmul.f32 1.442695, %v5371_v13  ;;  %v5390_v42 = vsel %vm8779_vm12, %v8355_v28, 0.0  ;;  %vm8791_vm12 = vmmov %vm8667_vm0 }
 0xa06   :  { %v5431_v2 = vpop.permute.xlu1 %5430  ;;  %v5365_v16 = vpop.xlane.xlu0 %5364  ;;  %5391 = vadd.xlane.f32.xlu1 %v5390_v42 }
 0xa07   :  { %7007 = vpow2.f32 %v5386_v48  ;;  %v5373_v57 = vsub.f32 %v5339_v7, %v5365_v16  ;;  %6806 = vmatpush3.msra.mxu1 %v5431_v2  ;;  %v6087_v16 = vld [vmem:[%s8525_s5] sm:$0xff] }
 0xa08   :  { %v8359_v50 = vpop.eup %6999  ;;  %7009 = vpow2.f32 %v5384_v20  ;;  %6815 = vmatprep.subr.mxu1 %v7029_v14 }
 0xa09   :  { %v8362_v39 = vpop.eup %7001  ;;  %v5388_v32 = vmul.f32 1.442695, %v5373_v57  ;;  %v5396_v59 = vsel %vm8667_vm0, %v8359_v50, 0.0  ;;  %v6088_v57 = vld [vmem:[%s8525_s5 + $0x8] sm:$0xff] }
 0xa0a   :  { %v5507_v43 = vpop.permute.xlu0 %5506  ;;  %v5393_v56 = vsel %vm8780_vm9, %v8362_v39, 0.0  ;;  %5397 = vadd.xlane.f32.xlu1 %v5396_v59  ;;  %vm8792_vm9 = vmmov %vm8667_vm0 }
 0xa0b   :  { %7011 = vpow2.f32 %v5388_v32  ;;  %5394 = vadd.xlane.f32.xlu0 %v5393_v56  ;;  %6811 = vmatpush3.msra.mxu0 %v5507_v43  ;;  %v6090_v32 = vld [vmem:[%s8525_s5 + $0x18] sm:$0xff] }
 0xa0c   :  { %6820 = vmatprep.subr.mxu0 %v7029_v14 }
 0xa0d   :  { %v8369_v60 = vpop.eup %7003 }
 0xa0e   :  { %v8371_v58 = vpop.eup %7005  ;;  %v5402_v51 = vsel %vm8781_vm7, %v8369_v60, 0.0  ;;  %vm8793_vm7 = vcmask 261120  }
 0xa0f   :  { %5403 = vadd.xlane.f32.xlu1 %v5402_v51  ;;  %v5399_v37 = vsel %vm8782_vm13, %v8371_v58, 0.0  ;;  %vm8794_vm13 = vmmov %vm8793_vm7 }
 0xa10   :  { %5400 = vadd.xlane.f32.xlu0 %v5399_v37 }
 0xa11   :  { %v8377_v35 = vpop.eup %7007 }
 0xa12   :  { %v8379_v40 = vpop.eup %7009  ;;  %v5408_v61 = vsel %vm8783_vm11, %v8377_v35, 0.0  ;;  %vm8795_vm11 = vmmov %vm8793_vm7 }
 0xa13   :  { %5409 = vadd.xlane.f32.xlu1 %v5408_v61  ;;  %v5405_v24 = vsel %vm8784_vm2, %v8379_v40, 0.0  ;;  %vm8796_vm2 = vmmov %vm8793_vm7 }
 0xa14   :  { %5406 = vadd.xlane.f32.xlu0 %v5405_v24 }
 0xa15   :  { %v8385_v41 = vpop.eup %7011 }
 0xa16   :  { %v5411_v1 = vsel %vm8785_vm8, %v8385_v41, 0.0  ;;  %vm8797_vm8 = vmmov %vm8796_vm2 }
 0xa18   :  { %5412 = vadd.xlane.f32.xlu0 %v5411_v1 }
 0xa24   :  { %5962 = vrot.lane.b32.xlu1 %v7158_v33, %s7043_s13  ;;  %v5583_v33 = vpop.permute.xlu1 %5582 }
 0xa28   :  { %3326 = vrot.lane.b32.xlu1 %v8109_v12, %s7044_s14 }
 0xa2c   :  { %4687 = vrot.lane.b32.xlu1 %v8311_v52, %s7045_s3 }
 0xa2e   :  { %5886 = vrot.lane.b32.xlu0 %v7163_v36, %s7043_s13  ;;  %v5659_v36 = vpop.permute.xlu1 %5658 }
 0xa30   :  { %3330 = vrot.lane.b32.xlu1 %v8117_v26, %s7044_s14 }
 0xa32   :  { %3324 = vrot.lane.b32.xlu0 %v8111_v15, %s7044_s14  ;;  %v5811_v12 = vpop.permute.xlu1 %5810 }
 0xa34   :  { %4691 = vrot.lane.b32.xlu1 %v8319_v5, %s7045_s3 }
 0xa36   :  { %4685 = vrot.lane.b32.xlu0 %v8313_v63, %s7045_s3 }
 0xa38   :  { %3334 = vrot.lane.b32.xlu1 %v8119_v34, %s7044_s14 }
 0xa3a   :  { %3328 = vrot.lane.b32.xlu0 %v8113_v22, %s7044_s14  ;;  %v5735_v22 = vpop.permute.xlu0 %5734 }
 0xa3c   :  { %4695 = vrot.lane.b32.xlu1 %v8321_v45, %s7045_s3 }
 0xa3e   :  { %4689 = vrot.lane.b32.xlu0 %v8315_v10, %s7045_s3 }
 0xa40   :  { %3338 = vrot.lane.b32.xlu1 %v8121_v38, %s7044_s14 }
 0xa42   :  { %3332 = vrot.lane.b32.xlu0 %v8115_v30, %s7044_s14 }
 0xa44   :  { %4699 = vrot.lane.b32.xlu1 %v8325_v29, %s7045_s3 }
 0xa46   :  { %4693 = vrot.lane.b32.xlu0 %v8317_v4, %s7045_s3 }
 0xa4a   :  { %3336 = vrot.lane.b32.xlu0 %v8125_v49, %s7044_s14 }
 0xa4e   :  { %4697 = vrot.lane.b32.xlu0 %v8323_v46, %s7045_s3 }
 0xa93   :  { %v5392_v15 = vpop.xlane.xlu1 %5391 }
 0xa94   :  { %7013 = vrcp.f32 %v5392_v15 }
 0xa97   :  { %v5398_v26 = vpop.xlane.xlu1 %5397 }
 0xa98   :  { %7015 = vrcp.f32 %v5398_v26  ;;  %v5395_v34 = vpop.xlane.xlu0 %5394 }
 0xa99   :  { %7017 = vrcp.f32 %v5395_v34 }
 0xa9c   :  { %v5404_v38 = vpop.xlane.xlu1 %5403 }
 0xa9d   :  { %7019 = vrcp.f32 %v5404_v38  ;;  %v5401_v30 = vpop.xlane.xlu0 %5400 }
 0xa9e   :  { %v7014_v52 = vpop.eup %7013  ;;  %7021 = vrcp.f32 %v5401_v30 }
 0xa9f   :  { %v5415_v63 = vmul.f32 %v7014_v52, %v8355_v28 }
 0xaa0   :  { %v5410_v49 = vpop.xlane.xlu1 %5409 }
 0xaa1   :  { %7023 = vrcp.f32 %v5410_v49  ;;  %v5407_v10 = vpop.xlane.xlu0 %5406  ;;  %6808 = vmatmul.mubr.msk.f32.vlgmr.msra.gmra.mrb[56].mxu1 %vm8786_vm14, %v5415_v63  ;;  %vm8798_vm14 = vmmov %vm8796_vm2 }
 0xaa2   :  { %v7016_v4 = vpop.eup %7015  ;;  %7025 = vrcp.f32 %v5407_v10  ;;  %6816 = vmatpush3.msra.mxu1 %v5583_v33  ;;  %6817 = vmatprep.mubr.msk.f32.mxu1 %vm8666_vm1, %v7029_v14 }
 0xaa3   :  { %v7018_v5 = vpop.eup %7017  ;;  %v5419_v45 = vmul.f32 %v7016_v4, %v8359_v50  ;;  %6825 = vmatprep.subr.mxu1 %v7029_v14  ;;  %v6873_v50 = vpack.c.bf16 %v6088_v57, %v6087_v16 }
 0xaa4   :  { %v5417_v46 = vmul.f32 %v7018_v5, %v8362_v39  ;;  %v5963_v29 = vpop.permute.xlu1 %5962  ;;  %v6089_v39 = vld [vmem:[%s8525_s5 + $0x10] sm:$0xff] }
 0xaa5   :  { %v5413_v7 = vpop.xlane.xlu0 %5412  ;;  %6818 = vmatmul.mubr.msk.f32.vlgmr.msra.gmra.mrb[58].mxu1 %vm8787_vm3, %v5419_v45  ;;  %v6877_v59 = vpack.c.bf16 %v6090_v32, %v6089_v39  ;;  %vm8799_vm3 = vmmov %vm8796_vm2 }
 0xaa6   :  { %7027 = vrcp.f32 %v5413_v7  ;;  %6813 = vmatmul.mubr.msk.f32.vlgmr.msra.gmra.mrb[64].mxu0 %vm8788_vm6, %v5417_v46  ;;  %6826 = vmatpush3.msra.mxu1 %v5735_v22  ;;  %vm8800_vm6 = vmmov %vm8796_vm2 }
 0xaa7   :  { %v7020_v54 = vpop.eup %7019  ;;  %6821 = vmatpush3.msra.mxu0 %v5659_v36  ;;  %6822 = vmatprep.mubr.msk.f32.mxu0 %vm8666_vm1, %v7029_v14 }
 0xaa8   :  { %v7022_v6 = vpop.eup %7021  ;;  %v5423_v0 = vmul.f32 %v7020_v54, %v8369_v60  ;;  %v3327_v9 = vpop.permute.xlu1 %3326  ;;  %6827 = vmatprep.mubr.msk.f32.mxu1 %vm8666_vm1, %v7029_v14  ;;  %6830 = vmatprep.subr.mxu0 %v7029_v14 }
 0xaa9   :  { %v5421_v31 = vmul.f32 %v7022_v6, %v8371_v58  ;;  %3350 = vst.msk [vmem:[#allocation2 + $0x8] sm:$0xff] %vm3348_vm5, %v3327_v9  ;;  %v5887_v8 = vpop.permute.xlu0 %5886  ;;  %6835 = vmatprep.subr.mxu1 %v7029_v14  ;;  %v6344_v6 = vld [vmem:[%s8526_s6] ss:$0 sm:$0xff] }
 0xaaa   :  { %6828 = vmatmul.mubr.msk.f32.vlgmr.msra.gmra.mrb[60].mxu1 %vm8789_vm10, %v5423_v0  ;;  %vm8802_vm10 = vmmov %vm8796_vm2 }
 0xaab   :  { %v7024_v19 = vpop.eup %7023  ;;  %6823 = vmatmul.mubr.msk.f32.vlgmr.msra.gmra.mrb[66].mxu0 %vm8790_vm15, %v5421_v31  ;;  %6836 = vmatpush3.msra.mxu1 %v5887_v8  ;;  %vm8804_vm15 = vmmov %vm8796_vm2 }
 0xaac   :  { %v7026_v55 = vpop.eup %7025  ;;  %v5427_v23 = vmul.f32 %v7024_v19, %v8377_v35  ;;  %6831 = vmatpush3.msra.mxu0 %v5811_v12  ;;  %v4688_v62 = vpop.permute.xlu1 %4687  ;;  %6832 = vmatprep.mubr.msk.f32.mxu0 %vm8666_vm1, %v7029_v14 }
 0xaad   :  { %v5425_v53 = vmul.f32 %v7026_v55, %v8379_v40  ;;  %4711 = vst.msk [vmem:[#allocation2 + $0x8] sm:$0xff] %vm4709_vm4, %v4688_v62  ;;  %v3325_v21 = vpop.permute.xlu0 %3324  ;;  %6837 = vmatprep.mubr.msk.f32.mxu1 %vm8666_vm1, %v7029_v14  ;;  %6840 = vmatprep.subr.mxu0 %v7029_v14 }
 0xaae   :  { %3349 = vst.msk [vmem:[#allocation2] sm:$0xff] %vm3348_vm5, %v3325_v21  ;;  %6838 = vmatmul.mubr.msk.f32.vlgmr.msra.gmra.mrb[62].mxu1 %vm8791_vm12, %v5427_v23  ;;  %6874 = vmatprep.subr.bf16.mxu1 %v6873_v50  ;;  %vm8805_vm12 = vmmov %vm8796_vm2 }
 0xaaf   :  { %6833 = vmatmul.mubr.msk.f32.vlgmr.msra.gmra.mrb[68].mxu0 %vm8667_vm0, %v5425_v53  ;;  %6876 = vmatpush3.bf16.msra.mxu1 %v6873_v50  ;;  %vm8806_vm0 = vmmov %vm8796_vm2 }
 0xab0   :  { %v7028_v44 = vpop.eup %7027  ;;  %6841 = vmatpush3.msra.mxu0 %v5963_v29  ;;  %v3331_v17 = vpop.permute.xlu1 %3330  ;;  %6842 = vmatprep.mubr.msk.f32.mxu0 %vm8666_vm1, %v7029_v14  ;;  %vm6070_vm1 = vcmask 261312  }
 0xab1   :  { %v5429_v11 = vmul.f32 %v7028_v44, %v8385_v41  ;;  %3352 = vst.msk [vmem:[#allocation2 + $0x18] sm:$0xff] %vm3348_vm5, %v3331_v17  ;;  %v4686_v25 = vpop.permute.xlu0 %4685  ;;  %6878 = vmatprep.subr.bf16.mxu1 %v6877_v59 }
 0xab2   :  { %4710 = vst.msk [vmem:[#allocation2] sm:$0xff] %vm4709_vm4, %v4686_v25 }
 0xab3   :  { %6843 = vmatmul.mubr.msk.f32.vlgmr.msra.gmra.mrb[70].mxu0 %vm8792_vm9, %v5429_v11  ;;  %6880 = vmatpush3.bf16.msra.mxu1 %v6877_v59  ;;  %vm8807_vm9 = vmmov %vm8806_vm0 }
 0xab4   :  { %v4692_v47 = vpop.permute.xlu1 %4691 }
 0xab5   :  { %4713 = vst.msk [vmem:[#allocation2 + $0x18] sm:$0xff] %vm4709_vm4, %v4692_v47  ;;  %v3329_v18 = vpop.permute.xlu0 %3328 }
 0xab6   :  { %3351 = vst.msk [vmem:[#allocation2 + $0x10] sm:$0xff] %vm3348_vm5, %v3329_v18 }
 0xab8   :  { %v3335_v27 = vpop.permute.xlu1 %3334 }
 0xab9   :  { %3354 = vst.msk [vmem:[#allocation2 + $0x28] sm:$0xff] %vm3348_vm5, %v3335_v27  ;;  %v4690_v3 = vpop.permute.xlu0 %4689 }
 0xaba   :  { %4712 = vst.msk [vmem:[#allocation2 + $0x10] sm:$0xff] %vm4709_vm4, %v4690_v3 }
 0xabc   :  { %v4696_v14 = vpop.permute.xlu1 %4695 }
 0xabd   :  { %4715 = vst.msk [vmem:[#allocation2 + $0x28] sm:$0xff] %vm4709_vm4, %v4696_v14  ;;  %v3333_v13 = vpop.permute.xlu0 %3332 }
 0xabe   :  { %3353 = vst.msk [vmem:[#allocation2 + $0x20] sm:$0xff] %vm3348_vm5, %v3333_v13 }
 0xac0   :  { %v3339_v28 = vpop.permute.xlu1 %3338 }
 0xac1   :  { %3356 = vst.msk [vmem:[#allocation2 + $0x38] sm:$0xff] %vm3348_vm5, %v3339_v28  ;;  %v4694_v48 = vpop.permute.xlu0 %4693 }
 0xac2   :  { %4714 = vst.msk [vmem:[#allocation2 + $0x20] sm:$0xff] %vm4709_vm4, %v4694_v48 }
 0xac4   :  { %v4700_v20 = vpop.permute.xlu1 %4699 }
 0xac5   :  { %4717 = vst.msk [vmem:[#allocation2 + $0x38] sm:$0xff] %vm4709_vm4, %v4700_v20  ;;  %v3337_v42 = vpop.permute.xlu0 %3336 }
 0xac6   :  { %3355 = vst.msk [vmem:[#allocation2 + $0x30] sm:$0xff] %vm3348_vm5, %v3337_v42  ;;  %vm8801_vm5 = vmmov %vm8796_vm2 }
 0xac9   :  { %v4698_v2 = vpop.permute.xlu0 %4697 }
 0xaca   :  { %4716 = vst.msk [vmem:[#allocation2 + $0x30] sm:$0xff] %vm4709_vm4, %v4698_v2  ;;  %vm8803_vm4 = vmmov %vm8796_vm2 }
 0xb74   :  { %v5502_v43 = vpop.f32.mrb[56].mxu1 }
 0xb75   :  { %v6809_v56 = vpop.f32.mrb[57].mxu1  ;;  %6046 = vrot.lane.b32.xlu0 %v5502_v43, %s7046_s23 }
 0xb78   :  { %v5654_v60 = vpop.f32.mrb[58].mxu1 }
 0xb79   :  { %v5578_v58 = vpop.f32.mrb[64].mxu0  ;;  %v6819_v51 = vpop.f32.mrb[59].mxu1  ;;  %6050 = vrot.lane.b32.xlu0 %v5654_v60, %s7046_s23 }
 0xb7a   :  { %6048 = vrot.lane.b32.xlu1 %v5578_v58, %s7046_s23  ;;  %v6814_v37 = vpop.f32.mrb[65].mxu0 }
 0xb7d   :  { %v5806_v35 = vpop.f32.mrb[60].mxu1 }
 0xb7e   :  { %v5730_v40 = vpop.f32.mrb[66].mxu0  ;;  %6054 = vrot.lane.b32.xlu0 %v5806_v35, %s7046_s23  ;;  %v6829_v61 = vpop.f32.mrb[61].mxu1 }
 0xb7f   :  { %6052 = vrot.lane.b32.xlu1 %v5730_v40, %s7046_s23  ;;  %v6824_v24 = vpop.f32.mrb[67].mxu0 }
 0xb81   :  { %v5958_v41 = vpop.f32.mrb[62].mxu1 }
 0xb82   :  { %v5882_v1 = vpop.f32.mrb[68].mxu0  ;;  %6058 = vrot.lane.b32.xlu0 %v5958_v41, %s7046_s23  ;;  %v6839_v33 = vpop.f32.mrb[63].mxu1 }
 0xb83   :  { %6056 = vrot.lane.b32.xlu1 %v5882_v1, %s7046_s23  ;;  %v6834_v36 = vpop.f32.mrb[69].mxu0 }
 0xb86   :  { %v6034_v12 = vpop.f32.mrb[70].mxu0 }
 0xb87   :  { %6060 = vrot.lane.b32.xlu1 %v6034_v12, %s7046_s23  ;;  %v6844_v15 = vpop.f32.mrb[71].mxu0 }
 0xbe7   :  { %v6047_v22 = vpop.permute.xlu0 %6046 }
 0xbe8   :  { %6071 = vst.msk [vmem:[#allocation2] sm:$0xff] %vm6070_vm1, %v6047_v22 }
 0xbeb   :  { %v6051_v26 = vpop.permute.xlu0 %6050 }
 0xbec   :  { %v6049_v34 = vpop.permute.xlu1 %6048  ;;  %6073 = vst.msk [vmem:[#allocation2 + $0x10] sm:$0xff] %vm6070_vm1, %v6051_v26 }
 0xbed   :  { %6072 = vst.msk [vmem:[#allocation2 + $0x8] sm:$0xff] %vm6070_vm1, %v6049_v34 }
 0xbef   :  { %v6079_v38 = vld [vmem:[#allocation2] sm:$0xff] }
 0xbf0   :  { %v6055_v30 = vpop.permute.xlu0 %6054  ;;  %6853 = vmatprep.mubr.msk.f32.mxu1 %vm8793_vm7, %v6079_v38 }
 0xbf1   :  { %v6053_v52 = vpop.permute.xlu1 %6052  ;;  %6075 = vst.msk [vmem:[#allocation2 + $0x20] sm:$0xff] %vm6070_vm1, %v6055_v30 }
 0xbf2   :  { %6074 = vst.msk [vmem:[#allocation2 + $0x18] sm:$0xff] %vm6070_vm1, %v6053_v52 }
 0xbf3   :  { %v6081_v63 = vld [vmem:[#allocation2 + $0x10] sm:$0xff] }
 0xbf4   :  { %v6059_v49 = vpop.permute.xlu0 %6058  ;;  %v6080_v10 = vld [vmem:[#allocation2 + $0x8] sm:$0xff] }
 0xbf5   :  { %v6057_v4 = vpop.permute.xlu1 %6056  ;;  %6077 = vst.msk [vmem:[#allocation2 + $0x30] sm:$0xff] %vm6070_vm1, %v6059_v49  ;;  %6854 = vmatmul.mubr.msk.f32.vlgmr.msra.gmra.mrb[64].mxu1 %vm8794_vm13, %v6080_v10 }
 0xbf6   :  { %6076 = vst.msk [vmem:[#allocation2 + $0x28] sm:$0xff] %vm6070_vm1, %v6057_v4  ;;  %6856 = vmatprep.mubr.msk.f32.mxu1 %vm8795_vm11, %v6081_v63 }
 0xbf8   :  { %v6083_v5 = vld [vmem:[#allocation2 + $0x20] sm:$0xff] }
 0xbf9   :  { %v6061_v45 = vpop.permute.xlu1 %6060  ;;  %v6082_v46 = vld [vmem:[#allocation2 + $0x18] sm:$0xff] }
 0xbfa   :  { %6078 = vst.msk [vmem:[#allocation2 + $0x38] sm:$0xff] %vm6070_vm1, %v6061_v45  ;;  %6857 = vmatmul.mubr.msk.f32.gmra.mrb[66].mxu1 %vm8796_vm2, %v6082_v46  ;;  %vm8808_vm1 = vmmov %vm8806_vm0 }
 0xbfb   :  { %6859 = vmatprep.mubr.msk.f32.mxu1 %vm8797_vm8, %v6083_v5 }
 0xbfc   :  { %v6085_v29 = vld [vmem:[#allocation2 + $0x30] sm:$0xff] }
 0xbfd   :  { %v6084_v7 = vld [vmem:[#allocation2 + $0x28] sm:$0xff] }
 0xbfe   :  { %6860 = vmatmul.mubr.msk.f32.gmra.mrb[68].mxu1 %vm8798_vm14, %v6084_v7 }
 0xbff   :  { %6862 = vmatprep.mubr.msk.f32.mxu1 %vm8799_vm3, %v6085_v29 }
 0xc01   :  { %v6086_v54 = vld [vmem:[#allocation2 + $0x38] sm:$0xff] }
 0xc02   :  { %6863 = vmatmul.mubr.msk.f32.gmra.mrb[70].mxu1 %vm8800_vm6, %v6086_v54 }
 0xcc8   :  { %v6855_v0 = vpop.f32.mrb[64].mxu1 }
 0xcc9   :  { %v6194_v9 = vadd.f32 %v6855_v0, %v6344_v6  ;;  %v6188_v31 = vpop.f32.mrb[65].mxu1 }
 0xcca   :  { %v6189_v8 = vadd.f32 %v6344_v6, %v6188_v31 }
 0xccb   :  { %6228 = vst.msk [vmem:[%s8527_s7 + $0x8] sm:$0xff] %vm8801_vm5, %v6194_v9 }
 0xccc   :  { %6227 = vst.msk [vmem:[%s8527_s7] sm:$0xff] %vm8802_vm10, %v6189_v8 }
 0xccd   :  { %v6858_v19 = vpop.f32.mrb[66].mxu1 }
 0xcce   :  { %v6204_v55 = vadd.f32 %v6858_v19, %v6344_v6  ;;  %v6198_v23 = vpop.f32.mrb[67].mxu1 }
 0xccf   :  { %v6199_v62 = vadd.f32 %v6344_v6, %v6198_v23 }
 0xcd0   :  { %6230 = vst.msk [vmem:[%s8527_s7 + $0x18] sm:$0xff] %vm8803_vm4, %v6204_v55 }
 0xcd1   :  { %6229 = vst.msk [vmem:[%s8527_s7 + $0x10] sm:$0xff] %vm8804_vm15, %v6199_v62  ;;  %v6861_v53 = vpop.f32.mrb[68].mxu1 }
 0xcd2   :  { %v6214_v21 = vadd.f32 %v6861_v53, %v6344_v6  ;;  %v6208_v44 = vpop.f32.mrb[69].mxu1 }
 0xcd3   :  { %v6209_v17 = vadd.f32 %v6344_v6, %v6208_v44 }
 0xcd4   :  { %6232 = vst.msk [vmem:[%s8527_s7 + $0x28] sm:$0xff] %vm8805_vm12, %v6214_v21 }
 0xcd5   :  { %6231 = vst.msk [vmem:[%s8527_s7 + $0x20] sm:$0xff] %vm8806_vm0, %v6209_v17  ;;  %v6864_v11 = vpop.f32.mrb[70].mxu1 }
 0xcd6   :  { %v6224_v25 = vadd.f32 %v6864_v11, %v6344_v6  ;;  %v6218_v47 = vpop.f32.mrb[71].mxu1 }
 0xcd7   :  { %v6219_v18 = vadd.f32 %v6344_v6, %v6218_v47 }
 0xcd8   :  { %6234 = vst.msk [vmem:[%s8527_s7 + $0x38] sm:$0xff] %vm8807_vm9, %v6224_v25 }
 0xcd9   :  { %6233 = vst.msk [vmem:[%s8527_s7 + $0x30] sm:$0xff] %vm8808_vm1, %v6219_v18 }

</bundles_post_ra>
